<compile_context>
chip_gen: v5e
topology: v5e:2x2
jax: 0.10.0
libtpu: 0.0.40
codegen_flags: <defaults>
</compile_context>

<pallas_src>
import functools

import jax
import jax.numpy as jnp
from jax.experimental import pallas as pl
from jax.experimental.pallas import tpu as pltpu

# ----------------------------- model config ---------------------------------
VOCAB = 64
TYPE_VOCAB = 2
MAX_POS = 32
BATCH = 2
SEQ = 8
HIDDEN = 32
HEADS = 4
HEAD_DIM = HIDDEN // HEADS
FFN = 64
LAYERS = 2
LN_EPS = 1e-12


# ----------------------------- Pallas kernel --------------------------------
def _layernorm(x, gamma, beta, eps=LN_EPS):
    mu = jnp.mean(x, axis=-1, keepdims=True)
    var = jnp.mean((x - mu) ** 2, axis=-1, keepdims=True)
    return (x - mu) * jax.lax.rsqrt(var + eps) * gamma + beta


def fused_text_encoder_kernel(x_ref, bias_ref, eg_ref, eb_ref,
                              wqkv_ref, bqkv_ref, wo_ref, bo_ref,
                              g1_ref, b1_ref, wfc1_ref, bfc1_ref,
                              wfc2_ref, bfc2_ref, g2_ref, b2_ref,
                              o_ref, *, num_layers, num_heads):
    # x_ref:    (1, S, D)   summed embeddings for one batch element
    # bias_ref: (1, 1, S)   precomputed additive attention mask (-1e9 on pads)
    # weights:  stacked with a leading layer axis L; full arrays, DMA'd once.
    x = x_ref[0]                       # (S, D)
    neg_bias = bias_ref[0]             # (1, S)
    S, D = x.shape
    H = num_heads
    dh = D // H
    scale = 1.0 / float(dh) ** 0.5

    # Embedding LayerNorm
    h = _layernorm(x, eg_ref[...], eb_ref[...])

    # Statically unrolled layer loop — hidden state never leaves VMEM.
    for l in range(num_layers):
        # ---- multi-head self-attention (head-batched, no slicing/concat) ----
        # wqkv[l]: (3H, D, dh)  laid out as [q heads | k heads | v heads]
        hb = jnp.broadcast_to(h[None, :, :], (3 * H, S, D))
        qkv = jnp.einsum('gsd,gde->gse', hb, wqkv_ref[l],
                         preferred_element_type=jnp.float32)
        qkv = qkv + bqkv_ref[l]                         # (3H, S, dh)
        q = qkv[:H] * scale                             # fold 1/sqrt(dh) into q
        k = qkv[H:2 * H]
        v = qkv[2 * H:]

        scores = jnp.einsum('hqe,hke->hqk', q, k,
                            preferred_element_type=jnp.float32)
        scores = scores + neg_bias[None, :, :]          # (H, S, S)
        m = jnp.max(scores, axis=-1, keepdims=True)
        e = jnp.exp(scores - m)
        denom = jnp.sum(e, axis=-1, keepdims=True)
        p = e * pl.reciprocal(denom, approx=True)       # EUP slot, ~free
        ctx = jnp.einsum('hqk,hke->hqe', p, v,
                         preferred_element_type=jnp.float32)   # (H, S, dh)

        # Output projection absorbs the head merge: wo[l] is (H, dh, D).
        per_head = jnp.einsum('hse,hed->hsd', ctx, wo_ref[l],
                              preferred_element_type=jnp.float32)
        attn = jnp.sum(per_head, axis=0) + bo_ref[l]    # (S, D)
        h = _layernorm(h + attn, g1_ref[l], b1_ref[l])  # post-LN (BERT)

        # ---- feed-forward ----
        ff = jnp.dot(h, wfc1_ref[l],
                     preferred_element_type=jnp.float32) + bfc1_ref[l]
        ff = jax.nn.gelu(ff)
        ff = jnp.dot(ff, wfc2_ref[l],
                     preferred_element_type=jnp.float32) + bfc2_ref[l]
        h = _layernorm(h + ff, g2_ref[l], b2_ref[l])

    o_ref[0] = h


# ----------------------------- wrapper ---------------------------------------
def encode(emb, neg_bias, p):
    B, S, D = emb.shape

    def full(arr):
        nd = arr.ndim
        return pl.BlockSpec(arr.shape, lambda b, _nd=nd: (0,) * _nd)

    weights = [p["emb_ln_g"], p["emb_ln_b"],
               p["wqkv"], p["bqkv"], p["wo"], p["bo"],
               p["g1"], p["b1"],
               p["wfc1"], p["bfc1"], p["wfc2"], p["bfc2"],
               p["g2"], p["b2"]]

    return pl.pallas_call(
        functools.partial(fused_text_encoder_kernel,
                          num_layers=LAYERS, num_heads=HEADS),
        out_shape=jax.ShapeDtypeStruct((B, S, D), emb.dtype),
        grid=(B,),
        in_specs=[pl.BlockSpec((1, S, D), lambda b: (b, 0, 0)),
                  pl.BlockSpec((1, 1, S), lambda b: (b, 0, 0))]
                 + [full(w) for w in weights],
        out_specs=pl.BlockSpec((1, S, D), lambda b: (b, 0, 0)),
        compiler_params=pltpu.CompilerParams(
            dimension_semantics=("parallel",)),   # v7x: batch over the 2 TCs
    )(emb, neg_bias, *weights)


# ----------------------------- parameters ------------------------------------
def init_params(key):
    ks = jax.random.split(key, 7)
    nrm = lambda k, shape: (0.02 * jax.random.normal(k, shape)).astype(jnp.float32)
    params = {
        "word_emb": nrm(ks[0], (VOCAB, HIDDEN)),
        "pos_emb": nrm(ks[1], (MAX_POS, HIDDEN)),
        "type_emb": nrm(ks[2], (TYPE_VOCAB, HIDDEN)),
        "emb_ln_g": jnp.ones((1, HIDDEN), jnp.float32),
        "emb_ln_b": jnp.zeros((1, HIDDEN), jnp.float32),
        # per-layer weights stacked on a leading layer axis, head-major layouts
        "wqkv": nrm(ks[3], (LAYERS, 3 * HEADS, HIDDEN, HEAD_DIM)),
        "bqkv": jnp.zeros((LAYERS, 3 * HEADS, 1, HEAD_DIM), jnp.float32),
        "wo": nrm(ks[4], (LAYERS, HEADS, HEAD_DIM, HIDDEN)),
        "bo": jnp.zeros((LAYERS, 1, HIDDEN), jnp.float32),
        "g1": jnp.ones((LAYERS, 1, HIDDEN), jnp.float32),
        "b1": jnp.zeros((LAYERS, 1, HIDDEN), jnp.float32),
        "wfc1": nrm(ks[5], (LAYERS, HIDDEN, FFN)),
        "bfc1": jnp.zeros((LAYERS, 1, FFN), jnp.float32),
        "wfc2": nrm(ks[6], (LAYERS, FFN, HIDDEN)),
        "bfc2": jnp.zeros((LAYERS, 1, HIDDEN), jnp.float32),
        "g2": jnp.ones((LAYERS, 1, HIDDEN), jnp.float32),
        "b2": jnp.zeros((LAYERS, 1, HIDDEN), jnp.float32),
    }
    return params


# ----------------------------- forward ----------------------------------------
@functools.partial(jax.jit, static_argnames=("extract_type",))
def text_encoder_forward(params, input_ids, token_type_ids=None,
                         attention_mask=None, extract_type="patch"):
    B, S = input_ids.shape
    if token_type_ids is None:
        token_type_ids = jnp.zeros((B, S), jnp.int32)
    if attention_mask is None:
        attention_mask = jnp.ones((B, S), jnp.float32)
    attention_mask = attention_mask.astype(jnp.float32)

    # Embeddings (plain-JAX gather glue)
    emb = (params["word_emb"][input_ids]
           + params["pos_emb"][:S][None, :, :]
           + params["type_emb"][token_type_ids])

    # Additive attention mask, computed ONCE (hoisted out of the layer loop).
    neg_bias = ((1.0 - attention_mask) * (-1e9)).reshape(B, 1, S)

    # Single fused Pallas kernel: embedding LN + all encoder layers.
    hidden = encode(emb, neg_bias, params)

    # feature_extraction (tiny slicing glue, as in the reference)
    if extract_type == "patch":
        return hidden[:, 1:]
    elif extract_type == "cls":
        return hidden[:, 0]
    elif extract_type == "cls_patch":
        return hidden
    elif extract_type == "gap":
        return jnp.mean(hidden, axis=1)   # unmasked mean, matches torch.mean
    elif extract_type == "map":
        # TODO(synk): MultiheadAttentionPoolingHead ('map') not implemented.
        raise NotImplementedError("extract_type='map' not implemented")
    else:
        raise ValueError(f"Unknown extract_type: {extract_type}")


# ----------------------------- main -------------------------------------------
if __name__ == "__main__":
    key = jax.random.PRNGKey(0)
    pkey, dkey = jax.random.split(key)
    params = init_params(pkey)

    input_ids = jax.random.randint(dkey, (BATCH, SEQ), 0, VOCAB, dtype=jnp.int32)
    token_type_ids = jnp.zeros((BATCH, SEQ), jnp.int32)
    attention_mask = jnp.ones((BATCH, SEQ), jnp.float32)

    out = text_encoder_forward(params, input_ids, token_type_ids,
                               attention_mask, extract_type="patch")
    out = jax.block_until_ready(out)
    assert out.shape == (BATCH, SEQ - 1, HIDDEN), out.shape
    assert jnp.all(jnp.isfinite(out))
    print("KERNEL_OK")
</pallas_src>

<mosaic_0001>
module attributes {stable_mosaic.version = 11 : i64} {
  func.func @fused_text_encoder_kernel(%arg0: i32, %arg1: memref<1x8x32xf32, #tpu.memory_space<vmem>>, %arg2: memref<1x1x8xf32, #tpu.memory_space<vmem>>, %arg3: memref<1x32xf32, #tpu.memory_space<vmem>>, %arg4: memref<1x32xf32, #tpu.memory_space<vmem>>, %arg5: memref<2x12x32x8xf32, #tpu.memory_space<vmem>>, %arg6: memref<2x12x1x8xf32, #tpu.memory_space<vmem>>, %arg7: memref<2x4x8x32xf32, #tpu.memory_space<vmem>>, %arg8: memref<2x1x32xf32, #tpu.memory_space<vmem>>, %arg9: memref<2x1x32xf32, #tpu.memory_space<vmem>>, %arg10: memref<2x1x32xf32, #tpu.memory_space<vmem>>, %arg11: memref<2x32x64xf32, #tpu.memory_space<vmem>>, %arg12: memref<2x1x64xf32, #tpu.memory_space<vmem>>, %arg13: memref<2x64x32xf32, #tpu.memory_space<vmem>>, %arg14: memref<2x1x32xf32, #tpu.memory_space<vmem>>, %arg15: memref<2x1x32xf32, #tpu.memory_space<vmem>>, %arg16: memref<2x1x32xf32, #tpu.memory_space<vmem>>, %arg17: memref<1x8x32xf32, #tpu.memory_space<vmem>>) attributes {dimension_semantics = [#tpu.dimension_semantics<parallel>], iteration_bounds = array<i64: 2>, scalar_prefetch = 0 : i64, scratch_operands = 0 : i64, tpu.core_type = #tpu.core_type<tc>, window_params = [{transform_indices = @transform_0, window_bounds = array<i64: 1, 8, 32>}, {transform_indices = @transform_1, window_bounds = array<i64: 1, 1, 8>}, {pipeline_mode = #tpu.pipeline_mode<synchronous>, transform_indices = @transform_2, window_bounds = array<i64: 1, 32>}, {pipeline_mode = #tpu.pipeline_mode<synchronous>, transform_indices = @transform_3, window_bounds = array<i64: 1, 32>}, {pipeline_mode = #tpu.pipeline_mode<synchronous>, transform_indices = @transform_4, window_bounds = array<i64: 2, 12, 32, 8>}, {pipeline_mode = #tpu.pipeline_mode<synchronous>, transform_indices = @transform_5, window_bounds = array<i64: 2, 12, 1, 8>}, {pipeline_mode = #tpu.pipeline_mode<synchronous>, transform_indices = @transform_6, window_bounds = array<i64: 2, 4, 8, 32>}, {pipeline_mode = #tpu.pipeline_mode<synchronous>, transform_indices = @transform_7, window_bounds = array<i64: 2, 1, 32>}, {pipeline_mode = #tpu.pipeline_mode<synchronous>, transform_indices = @transform_8, window_bounds = array<i64: 2, 1, 32>}, {pipeline_mode = #tpu.pipeline_mode<synchronous>, transform_indices = @transform_9, window_bounds = array<i64: 2, 1, 32>}, {pipeline_mode = #tpu.pipeline_mode<synchronous>, transform_indices = @transform_10, window_bounds = array<i64: 2, 32, 64>}, {pipeline_mode = #tpu.pipeline_mode<synchronous>, transform_indices = @transform_11, window_bounds = array<i64: 2, 1, 64>}, {pipeline_mode = #tpu.pipeline_mode<synchronous>, transform_indices = @transform_12, window_bounds = array<i64: 2, 64, 32>}, {pipeline_mode = #tpu.pipeline_mode<synchronous>, transform_indices = @transform_13, window_bounds = array<i64: 2, 1, 32>}, {pipeline_mode = #tpu.pipeline_mode<synchronous>, transform_indices = @transform_14, window_bounds = array<i64: 2, 1, 32>}, {pipeline_mode = #tpu.pipeline_mode<synchronous>, transform_indices = @transform_15, window_bounds = array<i64: 2, 1, 32>}, {transform_indices = @transform_16, window_bounds = array<i64: 1, 8, 32>}]} {
    %c0 = arith.constant 0 : index
    %c0_0 = arith.constant 0 : index
    %c0_1 = arith.constant 0 : index
    %0 = vector.load %arg1[%c0, %c0_0, %c0_1] : memref<1x8x32xf32, #tpu.memory_space<vmem>>, vector<1x8x32xf32>
    %1 = vector.shape_cast %0 : vector<1x8x32xf32> to vector<8x32xf32>
    %c0_2 = arith.constant 0 : index
    %c0_3 = arith.constant 0 : index
    %c0_4 = arith.constant 0 : index
    %2 = vector.load %arg2[%c0_2, %c0_3, %c0_4] : memref<1x1x8xf32, #tpu.memory_space<vmem>>, vector<1x1x8xf32>
    %3 = vector.shape_cast %2 : vector<1x1x8xf32> to vector<1x8xf32>
    %c0_5 = arith.constant 0 : index
    %c0_6 = arith.constant 0 : index
    %4 = vector.load %arg3[%c0_5, %c0_6] : memref<1x32xf32, #tpu.memory_space<vmem>>, vector<1x32xf32>
    %c0_7 = arith.constant 0 : index
    %c0_8 = arith.constant 0 : index
    %5 = vector.load %arg4[%c0_7, %c0_8] : memref<1x32xf32, #tpu.memory_space<vmem>>, vector<1x32xf32>
    %cst = arith.constant dense<0.000000e+00> : vector<8xf32>
    %6 = vector.multi_reduction <add>, %1, %cst [1] : vector<8x32xf32> to vector<8xf32>
    %7 = vector.shape_cast %6 : vector<8xf32> to vector<8x1xf32>
    %cst_9 = arith.constant 3.200000e+01 : f32
    %8 = vector.broadcast %cst_9 : f32 to vector<8x1xf32>
    %9 = arith.divf %7, %8 : vector<8x1xf32>
    %10 = vector.broadcast %9 : vector<8x1xf32> to vector<8x32xf32>
    %11 = arith.subf %1, %10 : vector<8x32xf32>
    %12 = arith.mulf %11, %11 : vector<8x32xf32>
    %cst_10 = arith.constant dense<0.000000e+00> : vector<8xf32>
    %13 = vector.multi_reduction <add>, %12, %cst_10 [1] : vector<8x32xf32> to vector<8xf32>
    %14 = vector.shape_cast %13 : vector<8xf32> to vector<8x1xf32>
    %cst_11 = arith.constant 3.200000e+01 : f32
    %15 = vector.broadcast %cst_11 : f32 to vector<8x1xf32>
    %16 = arith.divf %14, %15 : vector<8x1xf32>
    %17 = vector.broadcast %9 : vector<8x1xf32> to vector<8x32xf32>
    %18 = arith.subf %1, %17 : vector<8x32xf32>
    %cst_12 = arith.constant 9.99999996E-13 : f32
    %19 = vector.broadcast %cst_12 : f32 to vector<8x1xf32>
    %20 = arith.addf %16, %19 : vector<8x1xf32>
    %21 = math.rsqrt %20 : vector<8x1xf32>
    %22 = vector.broadcast %21 : vector<8x1xf32> to vector<8x32xf32>
    %23 = arith.mulf %18, %22 : vector<8x32xf32>
    %24 = vector.broadcast %4 : vector<1x32xf32> to vector<8x32xf32>
    %25 = arith.mulf %23, %24 : vector<8x32xf32>
    %26 = vector.broadcast %5 : vector<1x32xf32> to vector<8x32xf32>
    %27 = arith.addf %25, %26 : vector<8x32xf32>
    %28 = vector.shape_cast %27 : vector<8x32xf32> to vector<1x8x32xf32>
    %29 = vector.shape_cast %28 : vector<1x8x32xf32> to vector<1x8x32xf32>
    %30 = vector.broadcast %29 : vector<1x8x32xf32> to vector<12x8x32xf32>
    %c0_13 = arith.constant 0 : index
    %c0_14 = arith.constant 0 : index
    %c0_15 = arith.constant 0 : index
    %c0_16 = arith.constant 0 : index
    %31 = vector.load %arg5[%c0_13, %c0_14, %c0_15, %c0_16] : memref<2x12x32x8xf32, #tpu.memory_space<vmem>>, vector<1x12x32x8xf32>
    %32 = vector.shape_cast %31 : vector<1x12x32x8xf32> to vector<12x32x8xf32>
    "tpu.trace_start"() <{level = 10 : i32, message = "gsd,gde->gse"}> : () -> ()
    %cst_17 = arith.constant dense<0.000000e+00> : vector<12x8x8xf32>
    %33 = tpu.matmul %30, %32, %cst_17 {dimension_numbers = #tpu.dot_dimension_numbers<[2], [1], [1], [2], [0, 0, 0, 1, 1, 2], [0], [0]>} : vector<12x8x32xf32>, vector<12x32x8xf32>, vector<12x8x8xf32> -> vector<12x8x8xf32>
    "tpu.trace_stop"() : () -> ()
    %c0_18 = arith.constant 0 : index
    %c0_19 = arith.constant 0 : index
    %c0_20 = arith.constant 0 : index
    %c0_21 = arith.constant 0 : index
    %34 = vector.load %arg6[%c0_18, %c0_19, %c0_20, %c0_21] : memref<2x12x1x8xf32, #tpu.memory_space<vmem>>, vector<1x12x1x8xf32>
    %35 = vector.shape_cast %34 : vector<1x12x1x8xf32> to vector<12x1x8xf32>
    %36 = vector.broadcast %35 : vector<12x1x8xf32> to vector<12x8x8xf32>
    %37 = arith.addf %33, %36 : vector<12x8x8xf32>
    %38 = vector.extract_strided_slice %37 {offsets = [0, 0, 0], sizes = [4, 8, 8], strides = [1, 1, 1]} : vector<12x8x8xf32> to vector<4x8x8xf32>
    %cst_22 = arith.constant 0.353553385 : f32
    %39 = vector.broadcast %cst_22 : f32 to vector<4x8x8xf32>
    %40 = arith.mulf %38, %39 : vector<4x8x8xf32>
    %41 = vector.extract_strided_slice %37 {offsets = [4, 0, 0], sizes = [4, 8, 8], strides = [1, 1, 1]} : vector<12x8x8xf32> to vector<4x8x8xf32>
    %42 = vector.extract_strided_slice %37 {offsets = [8, 0, 0], sizes = [4, 8, 8], strides = [1, 1, 1]} : vector<12x8x8xf32> to vector<4x8x8xf32>
    "tpu.trace_start"() <{level = 10 : i32, message = "hqe,hke->hqk"}> : () -> ()
    %cst_23 = arith.constant dense<0.000000e+00> : vector<4x8x8xf32>
    %43 = tpu.matmul %40, %41, %cst_23 {dimension_numbers = #tpu.dot_dimension_numbers<[2], [2], [1], [1], [0, 0, 0, 1, 1, 1], [0], [0]>} : vector<4x8x8xf32>, vector<4x8x8xf32>, vector<4x8x8xf32> -> vector<4x8x8xf32>
    "tpu.trace_stop"() : () -> ()
    %44 = vector.shape_cast %3 : vector<1x8xf32> to vector<1x1x8xf32>
    %45 = vector.broadcast %44 : vector<1x1x8xf32> to vector<4x8x8xf32>
    %46 = arith.addf %43, %45 : vector<4x8x8xf32>
    %cst_24 = arith.constant dense<0xFF800000> : vector<4x8xf32>
    %47 = vector.multi_reduction <maximumf>, %46, %cst_24 [2] : vector<4x8x8xf32> to vector<4x8xf32>
    %48 = vector.shape_cast %47 : vector<4x8xf32> to vector<4x8x1xf32>
    %49 = vector.broadcast %48 : vector<4x8x1xf32> to vector<4x8x8xf32>
    %50 = arith.subf %46, %49 : vector<4x8x8xf32>
    %51 = math.exp %50 : vector<4x8x8xf32>
    %cst_25 = arith.constant dense<0.000000e+00> : vector<4x8xf32>
    %52 = vector.multi_reduction <add>, %51, %cst_25 [2] : vector<4x8x8xf32> to vector<4x8xf32>
    %53 = vector.shape_cast %52 : vector<4x8xf32> to vector<4x8x1xf32>
    %54 = tpu.reciprocal %53 {approx = true} : vector<4x8x1xf32> -> vector<4x8x1xf32>
    %55 = vector.broadcast %54 : vector<4x8x1xf32> to vector<4x8x8xf32>
    %56 = arith.mulf %51, %55 : vector<4x8x8xf32>
    "tpu.trace_start"() <{level = 10 : i32, message = "hqk,hke->hqe"}> : () -> ()
    %cst_26 = arith.constant dense<0.000000e+00> : vector<4x8x8xf32>
    %57 = tpu.matmul %56, %42, %cst_26 {dimension_numbers = #tpu.dot_dimension_numbers<[2], [1], [1], [2], [0, 0, 0, 1, 1, 2], [0], [0]>} : vector<4x8x8xf32>, vector<4x8x8xf32>, vector<4x8x8xf32> -> vector<4x8x8xf32>
    "tpu.trace_stop"() : () -> ()
    %c0_27 = arith.constant 0 : index
    %c0_28 = arith.constant 0 : index
    %c0_29 = arith.constant 0 : index
    %c0_30 = arith.constant 0 : index
    %58 = vector.load %arg7[%c0_27, %c0_28, %c0_29, %c0_30] : memref<2x4x8x32xf32, #tpu.memory_space<vmem>>, vector<1x4x8x32xf32>
    %59 = vector.shape_cast %58 : vector<1x4x8x32xf32> to vector<4x8x32xf32>
    "tpu.trace_start"() <{level = 10 : i32, message = "hse,hed->hsd"}> : () -> ()
    %cst_31 = arith.constant dense<0.000000e+00> : vector<4x8x32xf32>
    %60 = tpu.matmul %57, %59, %cst_31 {dimension_numbers = #tpu.dot_dimension_numbers<[2], [1], [1], [2], [0, 0, 0, 1, 1, 2], [0], [0]>} : vector<4x8x8xf32>, vector<4x8x32xf32>, vector<4x8x32xf32> -> vector<4x8x32xf32>
    "tpu.trace_stop"() : () -> ()
    %cst_32 = arith.constant dense<0.000000e+00> : vector<8x32xf32>
    %61 = vector.multi_reduction <add>, %60, %cst_32 [0] : vector<4x8x32xf32> to vector<8x32xf32>
    %c0_33 = arith.constant 0 : index
    %c0_34 = arith.constant 0 : index
    %c0_35 = arith.constant 0 : index
    %62 = vector.load %arg8[%c0_33, %c0_34, %c0_35] : memref<2x1x32xf32, #tpu.memory_space<vmem>>, vector<1x1x32xf32>
    %63 = vector.shape_cast %62 : vector<1x1x32xf32> to vector<1x32xf32>
    %64 = vector.broadcast %63 : vector<1x32xf32> to vector<8x32xf32>
    %65 = arith.addf %61, %64 : vector<8x32xf32>
    %66 = arith.addf %27, %65 : vector<8x32xf32>
    %c0_36 = arith.constant 0 : index
    %c0_37 = arith.constant 0 : index
    %c0_38 = arith.constant 0 : index
    %67 = vector.load %arg9[%c0_36, %c0_37, %c0_38] : memref<2x1x32xf32, #tpu.memory_space<vmem>>, vector<1x1x32xf32>
    %68 = vector.shape_cast %67 : vector<1x1x32xf32> to vector<1x32xf32>
    %c0_39 = arith.constant 0 : index
    %c0_40 = arith.constant 0 : index
    %c0_41 = arith.constant 0 : index
    %69 = vector.load %arg10[%c0_39, %c0_40, %c0_41] : memref<2x1x32xf32, #tpu.memory_space<vmem>>, vector<1x1x32xf32>
    %70 = vector.shape_cast %69 : vector<1x1x32xf32> to vector<1x32xf32>
    %cst_42 = arith.constant dense<0.000000e+00> : vector<8xf32>
    %71 = vector.multi_reduction <add>, %66, %cst_42 [1] : vector<8x32xf32> to vector<8xf32>
    %72 = vector.shape_cast %71 : vector<8xf32> to vector<8x1xf32>
    %cst_43 = arith.constant 3.200000e+01 : f32
    %73 = vector.broadcast %cst_43 : f32 to vector<8x1xf32>
    %74 = arith.divf %72, %73 : vector<8x1xf32>
    %75 = vector.broadcast %74 : vector<8x1xf32> to vector<8x32xf32>
    %76 = arith.subf %66, %75 : vector<8x32xf32>
    %77 = arith.mulf %76, %76 : vector<8x32xf32>
    %cst_44 = arith.constant dense<0.000000e+00> : vector<8xf32>
    %78 = vector.multi_reduction <add>, %77, %cst_44 [1] : vector<8x32xf32> to vector<8xf32>
    %79 = vector.shape_cast %78 : vector<8xf32> to vector<8x1xf32>
    %cst_45 = arith.constant 3.200000e+01 : f32
    %80 = vector.broadcast %cst_45 : f32 to vector<8x1xf32>
    %81 = arith.divf %79, %80 : vector<8x1xf32>
    %82 = vector.broadcast %74 : vector<8x1xf32> to vector<8x32xf32>
    %83 = arith.subf %66, %82 : vector<8x32xf32>
    %cst_46 = arith.constant 9.99999996E-13 : f32
    %84 = vector.broadcast %cst_46 : f32 to vector<8x1xf32>
    %85 = arith.addf %81, %84 : vector<8x1xf32>
    %86 = math.rsqrt %85 : vector<8x1xf32>
    %87 = vector.broadcast %86 : vector<8x1xf32> to vector<8x32xf32>
    %88 = arith.mulf %83, %87 : vector<8x32xf32>
    %89 = vector.broadcast %68 : vector<1x32xf32> to vector<8x32xf32>
    %90 = arith.mulf %88, %89 : vector<8x32xf32>
    %91 = vector.broadcast %70 : vector<1x32xf32> to vector<8x32xf32>
    %92 = arith.addf %90, %91 : vector<8x32xf32>
    %c0_47 = arith.constant 0 : index
    %c0_48 = arith.constant 0 : index
    %c0_49 = arith.constant 0 : index
    %93 = vector.load %arg11[%c0_47, %c0_48, %c0_49] : memref<2x32x64xf32, #tpu.memory_space<vmem>>, vector<1x32x64xf32>
    %94 = vector.shape_cast %93 : vector<1x32x64xf32> to vector<32x64xf32>
    %cst_50 = arith.constant dense<0.000000e+00> : vector<8x64xf32>
    %95 = tpu.matmul %92, %94, %cst_50 {dimension_numbers = #tpu.dot_dimension_numbers<[1], [0], [0], [1], [0, 0, 1, 1], [], []>} : vector<8x32xf32>, vector<32x64xf32>, vector<8x64xf32> -> vector<8x64xf32>
    %c0_51 = arith.constant 0 : index
    %c0_52 = arith.constant 0 : index
    %c0_53 = arith.constant 0 : index
    %96 = vector.load %arg12[%c0_51, %c0_52, %c0_53] : memref<2x1x64xf32, #tpu.memory_space<vmem>>, vector<1x1x64xf32>
    %97 = vector.shape_cast %96 : vector<1x1x64xf32> to vector<1x64xf32>
    %98 = vector.broadcast %97 : vector<1x64xf32> to vector<8x64xf32>
    %99 = arith.addf %95, %98 : vector<8x64xf32>
    %100 = arith.mulf %99, %99 : vector<8x64xf32>
    %101 = arith.mulf %99, %100 : vector<8x64xf32>
    %cst_54 = arith.constant 4.471500e-02 : f32
    %102 = vector.broadcast %cst_54 : f32 to vector<8x64xf32>
    %103 = arith.mulf %102, %101 : vector<8x64xf32>
    %104 = arith.addf %99, %103 : vector<8x64xf32>
    %cst_55 = arith.constant 0.797884583 : f32
    %105 = vector.broadcast %cst_55 : f32 to vector<8x64xf32>
    %106 = arith.mulf %105, %104 : vector<8x64xf32>
    %107 = math.tanh %106 : vector<8x64xf32>
    %cst_56 = arith.constant 1.000000e+00 : f32
    %108 = vector.broadcast %cst_56 : f32 to vector<8x64xf32>
    %109 = arith.addf %108, %107 : vector<8x64xf32>
    %cst_57 = arith.constant 5.000000e-01 : f32
    %110 = vector.broadcast %cst_57 : f32 to vector<8x64xf32>
    %111 = arith.mulf %110, %109 : vector<8x64xf32>
    %112 = arith.mulf %99, %111 : vector<8x64xf32>
    %c0_58 = arith.constant 0 : index
    %c0_59 = arith.constant 0 : index
    %c0_60 = arith.constant 0 : index
    %113 = vector.load %arg13[%c0_58, %c0_59, %c0_60] : memref<2x64x32xf32, #tpu.memory_space<vmem>>, vector<1x64x32xf32>
    %114 = vector.shape_cast %113 : vector<1x64x32xf32> to vector<64x32xf32>
    %cst_61 = arith.constant dense<0.000000e+00> : vector<8x32xf32>
    %115 = tpu.matmul %112, %114, %cst_61 {dimension_numbers = #tpu.dot_dimension_numbers<[1], [0], [0], [1], [0, 0, 1, 1], [], []>} : vector<8x64xf32>, vector<64x32xf32>, vector<8x32xf32> -> vector<8x32xf32>
    %c0_62 = arith.constant 0 : index
    %c0_63 = arith.constant 0 : index
    %c0_64 = arith.constant 0 : index
    %116 = vector.load %arg14[%c0_62, %c0_63, %c0_64] : memref<2x1x32xf32, #tpu.memory_space<vmem>>, vector<1x1x32xf32>
    %117 = vector.shape_cast %116 : vector<1x1x32xf32> to vector<1x32xf32>
    %118 = vector.broadcast %117 : vector<1x32xf32> to vector<8x32xf32>
    %119 = arith.addf %115, %118 : vector<8x32xf32>
    %120 = arith.addf %92, %119 : vector<8x32xf32>
    %c0_65 = arith.constant 0 : index
    %c0_66 = arith.constant 0 : index
    %c0_67 = arith.constant 0 : index
    %121 = vector.load %arg15[%c0_65, %c0_66, %c0_67] : memref<2x1x32xf32, #tpu.memory_space<vmem>>, vector<1x1x32xf32>
    %122 = vector.shape_cast %121 : vector<1x1x32xf32> to vector<1x32xf32>
    %c0_68 = arith.constant 0 : index
    %c0_69 = arith.constant 0 : index
    %c0_70 = arith.constant 0 : index
    %123 = vector.load %arg16[%c0_68, %c0_69, %c0_70] : memref<2x1x32xf32, #tpu.memory_space<vmem>>, vector<1x1x32xf32>
    %124 = vector.shape_cast %123 : vector<1x1x32xf32> to vector<1x32xf32>
    %cst_71 = arith.constant dense<0.000000e+00> : vector<8xf32>
    %125 = vector.multi_reduction <add>, %120, %cst_71 [1] : vector<8x32xf32> to vector<8xf32>
    %126 = vector.shape_cast %125 : vector<8xf32> to vector<8x1xf32>
    %cst_72 = arith.constant 3.200000e+01 : f32
    %127 = vector.broadcast %cst_72 : f32 to vector<8x1xf32>
    %128 = arith.divf %126, %127 : vector<8x1xf32>
    %129 = vector.broadcast %128 : vector<8x1xf32> to vector<8x32xf32>
    %130 = arith.subf %120, %129 : vector<8x32xf32>
    %131 = arith.mulf %130, %130 : vector<8x32xf32>
    %cst_73 = arith.constant dense<0.000000e+00> : vector<8xf32>
    %132 = vector.multi_reduction <add>, %131, %cst_73 [1] : vector<8x32xf32> to vector<8xf32>
    %133 = vector.shape_cast %132 : vector<8xf32> to vector<8x1xf32>
    %cst_74 = arith.constant 3.200000e+01 : f32
    %134 = vector.broadcast %cst_74 : f32 to vector<8x1xf32>
    %135 = arith.divf %133, %134 : vector<8x1xf32>
    %136 = vector.broadcast %128 : vector<8x1xf32> to vector<8x32xf32>
    %137 = arith.subf %120, %136 : vector<8x32xf32>
    %cst_75 = arith.constant 9.99999996E-13 : f32
    %138 = vector.broadcast %cst_75 : f32 to vector<8x1xf32>
    %139 = arith.addf %135, %138 : vector<8x1xf32>
    %140 = math.rsqrt %139 : vector<8x1xf32>
    %141 = vector.broadcast %140 : vector<8x1xf32> to vector<8x32xf32>
    %142 = arith.mulf %137, %141 : vector<8x32xf32>
    %143 = vector.broadcast %122 : vector<1x32xf32> to vector<8x32xf32>
    %144 = arith.mulf %142, %143 : vector<8x32xf32>
    %145 = vector.broadcast %124 : vector<1x32xf32> to vector<8x32xf32>
    %146 = arith.addf %144, %145 : vector<8x32xf32>
    %147 = vector.shape_cast %146 : vector<8x32xf32> to vector<1x8x32xf32>
    %148 = vector.shape_cast %147 : vector<1x8x32xf32> to vector<1x8x32xf32>
    %149 = vector.broadcast %148 : vector<1x8x32xf32> to vector<12x8x32xf32>
    %c1 = arith.constant 1 : index
    %c0_76 = arith.constant 0 : index
    %c0_77 = arith.constant 0 : index
    %c0_78 = arith.constant 0 : index
    %150 = vector.load %arg5[%c1, %c0_76, %c0_77, %c0_78] : memref<2x12x32x8xf32, #tpu.memory_space<vmem>>, vector<1x12x32x8xf32>
    %151 = vector.shape_cast %150 : vector<1x12x32x8xf32> to vector<12x32x8xf32>
    "tpu.trace_start"() <{level = 10 : i32, message = "gsd,gde->gse"}> : () -> ()
    %cst_79 = arith.constant dense<0.000000e+00> : vector<12x8x8xf32>
    %152 = tpu.matmul %149, %151, %cst_79 {dimension_numbers = #tpu.dot_dimension_numbers<[2], [1], [1], [2], [0, 0, 0, 1, 1, 2], [0], [0]>} : vector<12x8x32xf32>, vector<12x32x8xf32>, vector<12x8x8xf32> -> vector<12x8x8xf32>
    "tpu.trace_stop"() : () -> ()
    %c1_80 = arith.constant 1 : index
    %c0_81 = arith.constant 0 : index
    %c0_82 = arith.constant 0 : index
    %c0_83 = arith.constant 0 : index
    %153 = vector.load %arg6[%c1_80, %c0_81, %c0_82, %c0_83] : memref<2x12x1x8xf32, #tpu.memory_space<vmem>>, vector<1x12x1x8xf32>
    %154 = vector.shape_cast %153 : vector<1x12x1x8xf32> to vector<12x1x8xf32>
    %155 = vector.broadcast %154 : vector<12x1x8xf32> to vector<12x8x8xf32>
    %156 = arith.addf %152, %155 : vector<12x8x8xf32>
    %157 = vector.extract_strided_slice %156 {offsets = [0, 0, 0], sizes = [4, 8, 8], strides = [1, 1, 1]} : vector<12x8x8xf32> to vector<4x8x8xf32>
    %cst_84 = arith.constant 0.353553385 : f32
    %158 = vector.broadcast %cst_84 : f32 to vector<4x8x8xf32>
    %159 = arith.mulf %157, %158 : vector<4x8x8xf32>
    %160 = vector.extract_strided_slice %156 {offsets = [4, 0, 0], sizes = [4, 8, 8], strides = [1, 1, 1]} : vector<12x8x8xf32> to vector<4x8x8xf32>
    %161 = vector.extract_strided_slice %156 {offsets = [8, 0, 0], sizes = [4, 8, 8], strides = [1, 1, 1]} : vector<12x8x8xf32> to vector<4x8x8xf32>
    "tpu.trace_start"() <{level = 10 : i32, message = "hqe,hke->hqk"}> : () -> ()
    %cst_85 = arith.constant dense<0.000000e+00> : vector<4x8x8xf32>
    %162 = tpu.matmul %159, %160, %cst_85 {dimension_numbers = #tpu.dot_dimension_numbers<[2], [2], [1], [1], [0, 0, 0, 1, 1, 1], [0], [0]>} : vector<4x8x8xf32>, vector<4x8x8xf32>, vector<4x8x8xf32> -> vector<4x8x8xf32>
    "tpu.trace_stop"() : () -> ()
    %163 = vector.shape_cast %3 : vector<1x8xf32> to vector<1x1x8xf32>
    %164 = vector.broadcast %163 : vector<1x1x8xf32> to vector<4x8x8xf32>
    %165 = arith.addf %162, %164 : vector<4x8x8xf32>
    %cst_86 = arith.constant dense<0xFF800000> : vector<4x8xf32>
    %166 = vector.multi_reduction <maximumf>, %165, %cst_86 [2] : vector<4x8x8xf32> to vector<4x8xf32>
    %167 = vector.shape_cast %166 : vector<4x8xf32> to vector<4x8x1xf32>
    %168 = vector.broadcast %167 : vector<4x8x1xf32> to vector<4x8x8xf32>
    %169 = arith.subf %165, %168 : vector<4x8x8xf32>
    %170 = math.exp %169 : vector<4x8x8xf32>
    %cst_87 = arith.constant dense<0.000000e+00> : vector<4x8xf32>
    %171 = vector.multi_reduction <add>, %170, %cst_87 [2] : vector<4x8x8xf32> to vector<4x8xf32>
    %172 = vector.shape_cast %171 : vector<4x8xf32> to vector<4x8x1xf32>
    %173 = tpu.reciprocal %172 {approx = true} : vector<4x8x1xf32> -> vector<4x8x1xf32>
    %174 = vector.broadcast %173 : vector<4x8x1xf32> to vector<4x8x8xf32>
    %175 = arith.mulf %170, %174 : vector<4x8x8xf32>
    "tpu.trace_start"() <{level = 10 : i32, message = "hqk,hke->hqe"}> : () -> ()
    %cst_88 = arith.constant dense<0.000000e+00> : vector<4x8x8xf32>
    %176 = tpu.matmul %175, %161, %cst_88 {dimension_numbers = #tpu.dot_dimension_numbers<[2], [1], [1], [2], [0, 0, 0, 1, 1, 2], [0], [0]>} : vector<4x8x8xf32>, vector<4x8x8xf32>, vector<4x8x8xf32> -> vector<4x8x8xf32>
    "tpu.trace_stop"() : () -> ()
    %c1_89 = arith.constant 1 : index
    %c0_90 = arith.constant 0 : index
    %c0_91 = arith.constant 0 : index
    %c0_92 = arith.constant 0 : index
    %177 = vector.load %arg7[%c1_89, %c0_90, %c0_91, %c0_92] : memref<2x4x8x32xf32, #tpu.memory_space<vmem>>, vector<1x4x8x32xf32>
    %178 = vector.shape_cast %177 : vector<1x4x8x32xf32> to vector<4x8x32xf32>
    "tpu.trace_start"() <{level = 10 : i32, message = "hse,hed->hsd"}> : () -> ()
    %cst_93 = arith.constant dense<0.000000e+00> : vector<4x8x32xf32>
    %179 = tpu.matmul %176, %178, %cst_93 {dimension_numbers = #tpu.dot_dimension_numbers<[2], [1], [1], [2], [0, 0, 0, 1, 1, 2], [0], [0]>} : vector<4x8x8xf32>, vector<4x8x32xf32>, vector<4x8x32xf32> -> vector<4x8x32xf32>
    "tpu.trace_stop"() : () -> ()
    %cst_94 = arith.constant dense<0.000000e+00> : vector<8x32xf32>
    %180 = vector.multi_reduction <add>, %179, %cst_94 [0] : vector<4x8x32xf32> to vector<8x32xf32>
    %c1_95 = arith.constant 1 : index
    %c0_96 = arith.constant 0 : index
    %c0_97 = arith.constant 0 : index
    %181 = vector.load %arg8[%c1_95, %c0_96, %c0_97] : memref<2x1x32xf32, #tpu.memory_space<vmem>>, vector<1x1x32xf32>
    %182 = vector.shape_cast %181 : vector<1x1x32xf32> to vector<1x32xf32>
    %183 = vector.broadcast %182 : vector<1x32xf32> to vector<8x32xf32>
    %184 = arith.addf %180, %183 : vector<8x32xf32>
    %185 = arith.addf %146, %184 : vector<8x32xf32>
    %c1_98 = arith.constant 1 : index
    %c0_99 = arith.constant 0 : index
    %c0_100 = arith.constant 0 : index
    %186 = vector.load %arg9[%c1_98, %c0_99, %c0_100] : memref<2x1x32xf32, #tpu.memory_space<vmem>>, vector<1x1x32xf32>
    %187 = vector.shape_cast %186 : vector<1x1x32xf32> to vector<1x32xf32>
    %c1_101 = arith.constant 1 : index
    %c0_102 = arith.constant 0 : index
    %c0_103 = arith.constant 0 : index
    %188 = vector.load %arg10[%c1_101, %c0_102, %c0_103] : memref<2x1x32xf32, #tpu.memory_space<vmem>>, vector<1x1x32xf32>
    %189 = vector.shape_cast %188 : vector<1x1x32xf32> to vector<1x32xf32>
    %cst_104 = arith.constant dense<0.000000e+00> : vector<8xf32>
    %190 = vector.multi_reduction <add>, %185, %cst_104 [1] : vector<8x32xf32> to vector<8xf32>
    %191 = vector.shape_cast %190 : vector<8xf32> to vector<8x1xf32>
    %cst_105 = arith.constant 3.200000e+01 : f32
    %192 = vector.broadcast %cst_105 : f32 to vector<8x1xf32>
    %193 = arith.divf %191, %192 : vector<8x1xf32>
    %194 = vector.broadcast %193 : vector<8x1xf32> to vector<8x32xf32>
    %195 = arith.subf %185, %194 : vector<8x32xf32>
    %196 = arith.mulf %195, %195 : vector<8x32xf32>
    %cst_106 = arith.constant dense<0.000000e+00> : vector<8xf32>
    %197 = vector.multi_reduction <add>, %196, %cst_106 [1] : vector<8x32xf32> to vector<8xf32>
    %198 = vector.shape_cast %197 : vector<8xf32> to vector<8x1xf32>
    %cst_107 = arith.constant 3.200000e+01 : f32
    %199 = vector.broadcast %cst_107 : f32 to vector<8x1xf32>
    %200 = arith.divf %198, %199 : vector<8x1xf32>
    %201 = vector.broadcast %193 : vector<8x1xf32> to vector<8x32xf32>
    %202 = arith.subf %185, %201 : vector<8x32xf32>
    %cst_108 = arith.constant 9.99999996E-13 : f32
    %203 = vector.broadcast %cst_108 : f32 to vector<8x1xf32>
    %204 = arith.addf %200, %203 : vector<8x1xf32>
    %205 = math.rsqrt %204 : vector<8x1xf32>
    %206 = vector.broadcast %205 : vector<8x1xf32> to vector<8x32xf32>
    %207 = arith.mulf %202, %206 : vector<8x32xf32>
    %208 = vector.broadcast %187 : vector<1x32xf32> to vector<8x32xf32>
    %209 = arith.mulf %207, %208 : vector<8x32xf32>
    %210 = vector.broadcast %189 : vector<1x32xf32> to vector<8x32xf32>
    %211 = arith.addf %209, %210 : vector<8x32xf32>
    %c1_109 = arith.constant 1 : index
    %c0_110 = arith.constant 0 : index
    %c0_111 = arith.constant 0 : index
    %212 = vector.load %arg11[%c1_109, %c0_110, %c0_111] : memref<2x32x64xf32, #tpu.memory_space<vmem>>, vector<1x32x64xf32>
    %213 = vector.shape_cast %212 : vector<1x32x64xf32> to vector<32x64xf32>
    %cst_112 = arith.constant dense<0.000000e+00> : vector<8x64xf32>
    %214 = tpu.matmul %211, %213, %cst_112 {dimension_numbers = #tpu.dot_dimension_numbers<[1], [0], [0], [1], [0, 0, 1, 1], [], []>} : vector<8x32xf32>, vector<32x64xf32>, vector<8x64xf32> -> vector<8x64xf32>
    %c1_113 = arith.constant 1 : index
    %c0_114 = arith.constant 0 : index
    %c0_115 = arith.constant 0 : index
    %215 = vector.load %arg12[%c1_113, %c0_114, %c0_115] : memref<2x1x64xf32, #tpu.memory_space<vmem>>, vector<1x1x64xf32>
    %216 = vector.shape_cast %215 : vector<1x1x64xf32> to vector<1x64xf32>
    %217 = vector.broadcast %216 : vector<1x64xf32> to vector<8x64xf32>
    %218 = arith.addf %214, %217 : vector<8x64xf32>
    %219 = arith.mulf %218, %218 : vector<8x64xf32>
    %220 = arith.mulf %218, %219 : vector<8x64xf32>
    %cst_116 = arith.constant 4.471500e-02 : f32
    %221 = vector.broadcast %cst_116 : f32 to vector<8x64xf32>
    %222 = arith.mulf %221, %220 : vector<8x64xf32>
    %223 = arith.addf %218, %222 : vector<8x64xf32>
    %cst_117 = arith.constant 0.797884583 : f32
    %224 = vector.broadcast %cst_117 : f32 to vector<8x64xf32>
    %225 = arith.mulf %224, %223 : vector<8x64xf32>
    %226 = math.tanh %225 : vector<8x64xf32>
    %cst_118 = arith.constant 1.000000e+00 : f32
    %227 = vector.broadcast %cst_118 : f32 to vector<8x64xf32>
    %228 = arith.addf %227, %226 : vector<8x64xf32>
    %cst_119 = arith.constant 5.000000e-01 : f32
    %229 = vector.broadcast %cst_119 : f32 to vector<8x64xf32>
    %230 = arith.mulf %229, %228 : vector<8x64xf32>
    %231 = arith.mulf %218, %230 : vector<8x64xf32>
    %c1_120 = arith.constant 1 : index
    %c0_121 = arith.constant 0 : index
    %c0_122 = arith.constant 0 : index
    %232 = vector.load %arg13[%c1_120, %c0_121, %c0_122] : memref<2x64x32xf32, #tpu.memory_space<vmem>>, vector<1x64x32xf32>
    %233 = vector.shape_cast %232 : vector<1x64x32xf32> to vector<64x32xf32>
    %cst_123 = arith.constant dense<0.000000e+00> : vector<8x32xf32>
    %234 = tpu.matmul %231, %233, %cst_123 {dimension_numbers = #tpu.dot_dimension_numbers<[1], [0], [0], [1], [0, 0, 1, 1], [], []>} : vector<8x64xf32>, vector<64x32xf32>, vector<8x32xf32> -> vector<8x32xf32>
    %c1_124 = arith.constant 1 : index
    %c0_125 = arith.constant 0 : index
    %c0_126 = arith.constant 0 : index
    %235 = vector.load %arg14[%c1_124, %c0_125, %c0_126] : memref<2x1x32xf32, #tpu.memory_space<vmem>>, vector<1x1x32xf32>
    %236 = vector.shape_cast %235 : vector<1x1x32xf32> to vector<1x32xf32>
    %237 = vector.broadcast %236 : vector<1x32xf32> to vector<8x32xf32>
    %238 = arith.addf %234, %237 : vector<8x32xf32>
    %239 = arith.addf %211, %238 : vector<8x32xf32>
    %c1_127 = arith.constant 1 : index
    %c0_128 = arith.constant 0 : index
    %c0_129 = arith.constant 0 : index
    %240 = vector.load %arg15[%c1_127, %c0_128, %c0_129] : memref<2x1x32xf32, #tpu.memory_space<vmem>>, vector<1x1x32xf32>
    %241 = vector.shape_cast %240 : vector<1x1x32xf32> to vector<1x32xf32>
    %c1_130 = arith.constant 1 : index
    %c0_131 = arith.constant 0 : index
    %c0_132 = arith.constant 0 : index
    %242 = vector.load %arg16[%c1_130, %c0_131, %c0_132] : memref<2x1x32xf32, #tpu.memory_space<vmem>>, vector<1x1x32xf32>
    %243 = vector.shape_cast %242 : vector<1x1x32xf32> to vector<1x32xf32>
    %cst_133 = arith.constant dense<0.000000e+00> : vector<8xf32>
    %244 = vector.multi_reduction <add>, %239, %cst_133 [1] : vector<8x32xf32> to vector<8xf32>
    %245 = vector.shape_cast %244 : vector<8xf32> to vector<8x1xf32>
    %cst_134 = arith.constant 3.200000e+01 : f32
    %246 = vector.broadcast %cst_134 : f32 to vector<8x1xf32>
    %247 = arith.divf %245, %246 : vector<8x1xf32>
    %248 = vector.broadcast %247 : vector<8x1xf32> to vector<8x32xf32>
    %249 = arith.subf %239, %248 : vector<8x32xf32>
    %250 = arith.mulf %249, %249 : vector<8x32xf32>
    %cst_135 = arith.constant dense<0.000000e+00> : vector<8xf32>
    %251 = vector.multi_reduction <add>, %250, %cst_135 [1] : vector<8x32xf32> to vector<8xf32>
    %252 = vector.shape_cast %251 : vector<8xf32> to vector<8x1xf32>
    %cst_136 = arith.constant 3.200000e+01 : f32
    %253 = vector.broadcast %cst_136 : f32 to vector<8x1xf32>
    %254 = arith.divf %252, %253 : vector<8x1xf32>
    %255 = vector.broadcast %247 : vector<8x1xf32> to vector<8x32xf32>
    %256 = arith.subf %239, %255 : vector<8x32xf32>
    %cst_137 = arith.constant 9.99999996E-13 : f32
    %257 = vector.broadcast %cst_137 : f32 to vector<8x1xf32>
    %258 = arith.addf %254, %257 : vector<8x1xf32>
    %259 = math.rsqrt %258 : vector<8x1xf32>
    %260 = vector.broadcast %259 : vector<8x1xf32> to vector<8x32xf32>
    %261 = arith.mulf %256, %260 : vector<8x32xf32>
    %262 = vector.broadcast %241 : vector<1x32xf32> to vector<8x32xf32>
    %263 = arith.mulf %261, %262 : vector<8x32xf32>
    %264 = vector.broadcast %243 : vector<1x32xf32> to vector<8x32xf32>
    %265 = arith.addf %263, %264 : vector<8x32xf32>
    %c0_138 = arith.constant 0 : index
    %c0_139 = arith.constant 0 : index
    %c0_140 = arith.constant 0 : index
    %266 = vector.load %arg17[%c0_138, %c0_139, %c0_140] : memref<1x8x32xf32, #tpu.memory_space<vmem>>, vector<1x8x32xf32>
    %267 = vector.shape_cast %266 : vector<1x8x32xf32> to vector<8x32xf32>
    %268 = vector.shape_cast %265 : vector<8x32xf32> to vector<1x8x32xf32>
    tpu.vector_store %arg17[%c0_138, %c0_139, %c0_140], %268 {strides = array<i32>} : memref<1x8x32xf32, #tpu.memory_space<vmem>>, vector<1x8x32xf32>,
    return
  }
  func.func @transform_0(%arg0: i32) -> (i32, i32, i32) {
    %c0_i32 = arith.constant 0 : i32
    %c0_i32_0 = arith.constant 0 : i32
    %c0_i32_1 = arith.constant 0 : i32
    return %arg0, %c0_i32, %c0_i32_0 : i32, i32, i32
  }
  func.func @transform_1(%arg0: i32) -> (i32, i32, i32) {
    %c0_i32 = arith.constant 0 : i32
    %c0_i32_0 = arith.constant 0 : i32
    %c0_i32_1 = arith.constant 0 : i32
    return %arg0, %c0_i32, %c0_i32_0 : i32, i32, i32
  }
  func.func @transform_2(%arg0: i32) -> (i32, i32) {
    %c0_i32 = arith.constant 0 : i32
    %c0_i32_0 = arith.constant 0 : i32
    %c0_i32_1 = arith.constant 0 : i32
    return %c0_i32, %c0_i32_0 : i32, i32
  }
  func.func @transform_3(%arg0: i32) -> (i32, i32) {
    %c0_i32 = arith.constant 0 : i32
    %c0_i32_0 = arith.constant 0 : i32
    %c0_i32_1 = arith.constant 0 : i32
    return %c0_i32, %c0_i32_0 : i32, i32
  }
  func.func @transform_4(%arg0: i32) -> (i32, i32, i32, i32) {
    %c0_i32 = arith.constant 0 : i32
    %c0_i32_0 = arith.constant 0 : i32
    %c0_i32_1 = arith.constant 0 : i32
    %c0_i32_2 = arith.constant 0 : i32
    %c0_i32_3 = arith.constant 0 : i32
    return %c0_i32, %c0_i32_0, %c0_i32_1, %c0_i32_2 : i32, i32, i32, i32
  }
  func.func @transform_5(%arg0: i32) -> (i32, i32, i32, i32) {
    %c0_i32 = arith.constant 0 : i32
    %c0_i32_0 = arith.constant 0 : i32
    %c0_i32_1 = arith.constant 0 : i32
    %c0_i32_2 = arith.constant 0 : i32
    %c0_i32_3 = arith.constant 0 : i32
    return %c0_i32, %c0_i32_0, %c0_i32_1, %c0_i32_2 : i32, i32, i32, i32
  }
  func.func @transform_6(%arg0: i32) -> (i32, i32, i32, i32) {
    %c0_i32 = arith.constant 0 : i32
    %c0_i32_0 = arith.constant 0 : i32
    %c0_i32_1 = arith.constant 0 : i32
    %c0_i32_2 = arith.constant 0 : i32
    %c0_i32_3 = arith.constant 0 : i32
    return %c0_i32, %c0_i32_0, %c0_i32_1, %c0_i32_2 : i32, i32, i32, i32
  }
  func.func @transform_7(%arg0: i32) -> (i32, i32, i32) {
    %c0_i32 = arith.constant 0 : i32
    %c0_i32_0 = arith.constant 0 : i32
    %c0_i32_1 = arith.constant 0 : i32
    %c0_i32_2 = arith.constant 0 : i32
    return %c0_i32, %c0_i32_0, %c0_i32_1 : i32, i32, i32
  }
  func.func @transform_8(%arg0: i32) -> (i32, i32, i32) {
    %c0_i32 = arith.constant 0 : i32
    %c0_i32_0 = arith.constant 0 : i32
    %c0_i32_1 = arith.constant 0 : i32
    %c0_i32_2 = arith.constant 0 : i32
    return %c0_i32, %c0_i32_0, %c0_i32_1 : i32, i32, i32
  }
  func.func @transform_9(%arg0: i32) -> (i32, i32, i32) {
    %c0_i32 = arith.constant 0 : i32
    %c0_i32_0 = arith.constant 0 : i32
    %c0_i32_1 = arith.constant 0 : i32
    %c0_i32_2 = arith.constant 0 : i32
    return %c0_i32, %c0_i32_0, %c0_i32_1 : i32, i32, i32
  }
  func.func @transform_10(%arg0: i32) -> (i32, i32, i32) {
    %c0_i32 = arith.constant 0 : i32
    %c0_i32_0 = arith.constant 0 : i32
    %c0_i32_1 = arith.constant 0 : i32
    %c0_i32_2 = arith.constant 0 : i32
    return %c0_i32, %c0_i32_0, %c0_i32_1 : i32, i32, i32
  }
  func.func @transform_11(%arg0: i32) -> (i32, i32, i32) {
    %c0_i32 = arith.constant 0 : i32
    %c0_i32_0 = arith.constant 0 : i32
    %c0_i32_1 = arith.constant 0 : i32
    %c0_i32_2 = arith.constant 0 : i32
    return %c0_i32, %c0_i32_0, %c0_i32_1 : i32, i32, i32
  }
  func.func @transform_12(%arg0: i32) -> (i32, i32, i32) {
    %c0_i32 = arith.constant 0 : i32
    %c0_i32_0 = arith.constant 0 : i32
    %c0_i32_1 = arith.constant 0 : i32
    %c0_i32_2 = arith.constant 0 : i32
    return %c0_i32, %c0_i32_0, %c0_i32_1 : i32, i32, i32
  }
  func.func @transform_13(%arg0: i32) -> (i32, i32, i32) {
    %c0_i32 = arith.constant 0 : i32
    %c0_i32_0 = arith.constant 0 : i32
    %c0_i32_1 = arith.constant 0 : i32
    %c0_i32_2 = arith.constant 0 : i32
    return %c0_i32, %c0_i32_0, %c0_i32_1 : i32, i32, i32
  }
  func.func @transform_14(%arg0: i32) -> (i32, i32, i32) {
    %c0_i32 = arith.constant 0 : i32
    %c0_i32_0 = arith.constant 0 : i32
    %c0_i32_1 = arith.constant 0 : i32
    %c0_i32_2 = arith.constant 0 : i32
    return %c0_i32, %c0_i32_0, %c0_i32_1 : i32, i32, i32
  }
  func.func @transform_15(%arg0: i32) -> (i32, i32, i32) {
    %c0_i32 = arith.constant 0 : i32
    %c0_i32_0 = arith.constant 0 : i32
    %c0_i32_1 = arith.constant 0 : i32
    %c0_i32_2 = arith.constant 0 : i32
    return %c0_i32, %c0_i32_0, %c0_i32_1 : i32, i32, i32
  }
  func.func @transform_16(%arg0: i32) -> (i32, i32, i32) {
    %c0_i32 = arith.constant 0 : i32
    %c0_i32_0 = arith.constant 0 : i32
    %c0_i32_1 = arith.constant 0 : i32
    return %arg0, %c0_i32, %c0_i32_0 : i32, i32, i32
  }
}

</mosaic_0001>

<bundles_post_ra>
// kernel: text_encoder_forward.1
= control target key start
LH: loop header
LB: loop body
LE: loop exit
PB: predicated region body
PF: predicated region fallthrough
CT: control target
= control target key end

     0   :  { %s2661_s21 = smov 0   ;;  %s3355_s0 = inlined_call_operand.vmem [shape: f32[2,8,32], index: 0, kind: input, shape index: {}]   ;;  %s3356_s1 = inlined_call_operand.vmem [shape: f32[2,1,8], index: 1, kind: input, shape index: {}]   ;;  %s3357_s2 = inlined_call_operand.vmem [shape: f32[1,32], index: 2, kind: input, shape index: {}]   ;;  %s3358_s3 = inlined_call_operand.vmem [shape: f32[1,32], index: 3, kind: input, shape index: {}]   ;;  %s3359_s4 = inlined_call_operand.vmem [shape: f32[2,12,32,8], index: 4, kind: input, shape index: {}]   ;;  %s3360_s5 = inlined_call_operand.vmem [shape: f32[2,12,1,8], index: 5, kind: input, shape index: {}]   ;;  %s3361_s6 = inlined_call_operand.vmem [shape: f32[2,4,8,32], index: 6, kind: input, shape index: {}]   ;;  %s3362_s7 = inlined_call_operand.vmem [shape: f32[2,1,32], index: 7, kind: input, shape index: {}]   ;;  %s3363_s8 = inlined_call_operand.vmem [shape: f32[2,1,32], index: 8, kind: input, shape index: {}]   ;;  %s3364_s9 = inlined_call_operand.vmem [shape: f32[2,1,32], index: 9, kind: input, shape index: {}]   ;;  %s3365_s10 = inlined_call_operand.vmem [shape: f32[2,32,64], index: 10, kind: input, shape index: {}]   ;;  %s3366_s11 = inlined_call_operand.vmem [shape: f32[2,1,64], index: 11, kind: input, shape index: {}]   ;;  %s3367_s12 = inlined_call_operand.vmem [shape: f32[2,64,32], index: 12, kind: input, shape index: {}]   ;;  %s3368_s13 = inlined_call_operand.vmem [shape: f32[2,1,32], index: 13, kind: input, shape index: {}]   ;;  %s3369_s14 = inlined_call_operand.vmem [shape: f32[2,1,32], index: 14, kind: input, shape index: {}]   ;;  %s3370_s15 = inlined_call_operand.vmem [shape: f32[2,1,32], index: 15, kind: input, shape index: {}]   ;;  %s3371_s16 = inlined_call_operand.vmem [shape: f32[2,8,32], index: 16, kind: output, shape index: {}]  }
   0x1   :  { %3372 = sst [smem:[#allocation2_spill]] %s3355_s0 }
   0x2 LB: > { %s2317_s22 = sadd.s32 4294967295, %s2573_s21   ;;  %p2321_p0 = scmp.ge.s32.totalorder %s2573_s21, 1  ;;  %s2573_s21 = sphi %s2661_s21, %s26_s21  }
   0x3   : > { %p469_p1 = scmp.lt.s32.totalorder %s2573_s21, 3 }
   0x5   : > { %p470_p2 = pnand %p2321_p0, %p469_p1 }
   0x6   : > { %p520_p3 = scmp.lt.s32.totalorder (!%p470_p2), %s2317_s22, 1  ;;  %s3373_s29 = sld [smem:[#allocation2_spill]] (!%p470_p2) }
   0x7   : > { %473 = sbr.rel (%p470_p2) target bundleno = 3550 (0xdde), region = 84 }
   0xc   : > { %s3375_s22 = smov (!%p520_p3, %s2317_s22), 1  ;;  %vm535_vm0 = vcmask 261120   ;;  %v2575_v2 = vmov 32.0   ;;  %v576_v14 = vld [vmem:[%s3359_s4 + $0x18] sm:$0xff]  ;;  %v575_v18 = vld [vmem:[%s3359_s4 + $0x10] sm:$0xff]  ;;  %v574_v22 = vld [vmem:[%s3359_s4 + $0x8] sm:$0xff] }
   0xd   : > { %s2322_s23 = sshll.u32 %s3375_s22, 3  ;;  %s526_s26 = scalar_lea.vmem %s3356_s1, %s3375_s22  ;;  %2519 = vrcp.f32 %v2575_v2  ;;  %v584_v15 = vld [vmem:[%s3359_s4 + $0x58] sm:$0xff]  ;;  %684 = vmatpush.msra.mxu1 %v576_v14  ;;  %v583_v19 = vld [vmem:[%s3359_s4 + $0x50] sm:$0xff]  ;;  %v582_v23 = vld [vmem:[%s3359_s4 + $0x48] sm:$0xff]  ;;  %vm919_vm5 = vcmask 64512   ;;  %vm1353_vm9 = vcmask 523264  }
   0xe   : > { %s523_s30 = scalar_lea.vmem %s3373_s29, %s2322_s23  ;;  %v588_v16 = vld [vmem:[%s3359_s4 + $0x78] sm:$0xff]  ;;  %724 = vmatpush.msra.mxu2 %v584_v15  ;;  %v587_v20 = vld [vmem:[%s3359_s4 + $0x70] sm:$0xff]  ;;  %v586_v24 = vld [vmem:[%s3359_s4 + $0x68] sm:$0xff]  ;;  %s530_s19 = scalar_lea.vmem %s3371_s16, %s2322_s23 }
   0xf   : > { %v531_v0 = vld [vmem:[%s523_s30] sm:$0xff]  ;;  %v592_v17 = vld [vmem:[%s3359_s4 + $0x98] sm:$0xff]  ;;  %744 = vmatpush.msra.mxu3 %v588_v16  ;;  %685 = vmatpush.msra.mxu1 %v575_v18  ;;  %v591_v21 = vld [vmem:[%s3359_s4 + $0x90] sm:$0xff] }
  0x10   : > { %v536_v1 = vsel %vm535_vm0, %v531_v0, 0.0  ;;  %764 = vmatpush.msra.mxu0 %v592_v17  ;;  %725 = vmatpush.msra.mxu2 %v583_v19  ;;  %v590_v25 = vld [vmem:[%s3359_s4 + $0x88] sm:$0xff]  ;;  %v573_v26 = vld [vmem:[%s3359_s4] sm:$0xff]  ;;  %v580_v30 = vld [vmem:[%s3359_s4 + $0x38] sm:$0xff] }
  0x11   : > { %537 = vadd.xlane.f32.xlu0 %v536_v1  ;;  %745 = vmatpush.msra.mxu3 %v587_v20  ;;  %v581_v27 = vld [vmem:[%s3359_s4 + $0x40] sm:$0xff]  ;;  %v600_v31 = vld [vmem:[%s3359_s4 + $0xd8] sm:$0xff]  ;;  %v579_v34 = vld [vmem:[%s3359_s4 + $0x30] sm:$0xff] }
  0x12   : > { %765 = vmatpush.msra.mxu0 %v591_v21  ;;  %686 = vmatpush.msra.mxu1 %v574_v22  ;;  %v585_v28 = vld [vmem:[%s3359_s4 + $0x60] sm:$0xff]  ;;  %v604_v32 = vld [vmem:[%s3359_s4 + $0xf8] sm:$0xff]  ;;  %v599_v35 = vld [vmem:[%s3359_s4 + $0xd0] sm:$0xff] }
  0x13   : > { %v2520_v3 = vpop.eup %2519  ;;  %726 = vmatpush.msra.mxu2 %v582_v23  ;;  %746 = vmatpush.msra.mxu3 %v586_v24  ;;  %v589_v29 = vld [vmem:[%s3359_s4 + $0x80] sm:$0xff]  ;;  %v608_v33 = vld [vmem:[%s3359_s4 + $0x118] sm:$0xff]  ;;  %v603_v37 = vld [vmem:[%s3359_s4 + $0xf0] sm:$0xff] }
  0x14   : > { %v540_v4 = vmul.f32 32.0, %v2520_v3  ;;  %vm544_vm1 = vweird.f32 %v2520_v3  ;;  %766 = vmatpush.msra.mxu0 %v590_v25  ;;  %687 = vmatpush.msra.mxu1 %v573_v26  ;;  %v607_v38 = vld [vmem:[%s3359_s4 + $0x110] sm:$0xff]  ;;  %v578_v39 = vld [vmem:[%s3359_s4 + $0x28] sm:$0xff]  ;;  %v577_v44 = vld [vmem:[%s3359_s4 + $0x20] sm:$0xff] }
  0x15   : > { %727 = vmatpush.msra.mxu2 %v581_v27  ;;  %747 = vmatpush.msra.mxu3 %v585_v28  ;;  %v598_v41 = vld [vmem:[%s3359_s4 + $0xc8] sm:$0xff]  ;;  %v597_v45 = vld [vmem:[%s3359_s4 + $0xc0] sm:$0xff]  ;;  %v596_v61 = vld [vmem:[%s3359_s4 + $0xb8] sm:$0xff] }
  0x16   : > { %v541_v5 = vsub.f32 1.0, %v540_v4  ;;  %767 = vmatpush.msra.mxu0 %v589_v29  ;;  %704 = vmatpush.msrb.mxu1 %v580_v30  ;;  %v602_v42 = vld [vmem:[%s3359_s4 + $0xe8] sm:$0xff]  ;;  %v601_v47 = vld [vmem:[%s3359_s4 + $0xe0] sm:$0xff]  ;;  %v616_v62 = vld [vmem:[%s3359_s4 + $0x158] sm:$0xff] }
  0x17   : > { %804 = vmatpush.msrb.mxu2 %v600_v31  ;;  %824 = vmatpush.msrb.mxu3 %v604_v32  ;;  %v606_v43 = vld [vmem:[%s3359_s4 + $0x108] sm:$0xff]  ;;  %v605_v48 = vld [vmem:[%s3359_s4 + $0x100] sm:$0xff]  ;;  %v620_v63 = vld [vmem:[%s3359_s4 + $0x178] sm:$0xff] }
  0x18   : > { %v542_v6 = vmul.f32 %v2520_v3, %v541_v5  ;;  %844 = vmatpush.msrb.mxu0 %v608_v33  ;;  %705 = vmatpush.msrb.mxu1 %v579_v34  ;;  %v2479_v55 = vld [vmem:[%s3357_s2] ss:$0 sm:$0xff]  ;;  %v615_v1 = vld [vmem:[%s3359_s4 + $0x150] sm:$0xff]  ;;  %v614_v4 = vld [vmem:[%s3359_s4 + $0x148] sm:$0xff] }
  0x19   : > { %805 = vmatpush.msrb.mxu2 %v599_v35  ;;  %825 = vmatpush.msrb.mxu3 %v603_v37  ;;  %v2480_v57 = vld [vmem:[%s3358_s3] ss:$0 sm:$0xff]  ;;  %v619_v2 = vld [vmem:[%s3359_s4 + $0x170] sm:$0xff]  ;;  %v618_v5 = vld [vmem:[%s3359_s4 + $0x168] sm:$0xff] }
  0x1a   : > { %v543_v7 = vadd.f32 %v2520_v3, %v542_v6  ;;  %845 = vmatpush.msrb.mxu0 %v607_v38  ;;  %706 = vmatpush.msrb.mxu1 %v578_v39  ;;  %v593_v6 = vld [vmem:[%s3359_s4 + $0xa0] sm:$0xff]  ;;  %v2486_v22 = vld [vmem:[%s3360_s5 + $0x8] ss:$0 sm:$0xff] }
  0x1b   : > { %806 = vmatpush.msrb.mxu2 %v598_v41  ;;  %826 = vmatpush.msrb.mxu3 %v602_v42  ;;  %v2481_v14 = vld [vmem:[%s3360_s5] ss:$0 sm:$0xff]  ;;  %v2482_v15 = vld [vmem:[%s3360_s5 + $0x4] ss:$0 sm:$0xff]  ;;  %v2483_v26 = vld [vmem:[%s3360_s5 + $0x2] ss:$0 sm:$0xff] }
  0x1c   : > { %v2682_v8 = vsel %vm544_vm1, %v2520_v3, %v543_v7  ;;  %846 = vmatpush.msrb.mxu0 %v606_v43  ;;  %707 = vmatpush.msrb.mxu1 %v577_v44  ;;  %v594_v3 = vld [vmem:[%s3359_s4 + $0xa8] sm:$0xff]  ;;  %v613_v7 = vld [vmem:[%s3359_s4 + $0x140] sm:$0xff] }
  0x1d   : > { %807 = vmatpush.msrb.mxu2 %v597_v45  ;;  %827 = vmatpush.msrb.mxu3 %v601_v47  ;;  %v2484_v28 = vld [vmem:[%s3360_s5 + $0x3] ss:$0 sm:$0xff]  ;;  %v2487_v29 = vld [vmem:[%s3360_s5 + $0x6] ss:$0 sm:$0xff]  ;;  %v2485_v30 = vld [vmem:[%s3360_s5 + $0x1] ss:$0 sm:$0xff] }
  0x1e   : > { %847 = vmatpush.msrb.mxu0 %v605_v48  ;;  %v2488_v31 = vld [vmem:[%s3360_s5 + $0x7] ss:$0 sm:$0xff]  ;;  %v2489_v32 = vld [vmem:[%s3360_s5 + $0x5] ss:$0 sm:$0xff]  ;;  %v2490_v44 = vld [vmem:[%s3360_s5 + $0xa] ss:$0 sm:$0xff] }
  0x1f   : > { %v2492_v47 = vld [vmem:[%s3360_s5 + $0x9] ss:$0 sm:$0xff] }
  0x84   : > { %v538_v9 = vpop.xlane.xlu0 %537 }
  0x85   : > { %v546_v10 = vmul.f32 %v2682_v8, %v538_v9  ;;  %v617_v9 = vld [vmem:[%s3359_s4 + $0x160] sm:$0xff] }
  0x87   : > { %v2685_v11 = vsub.f32 %v531_v0, %v546_v10  ;;  %v595_v0 = vld [vmem:[%s3359_s4 + $0xb0] sm:$0xff]  ;;  %v612_v10 = vld [vmem:[%s3359_s4 + $0x138] sm:$0xff] }
  0x89   : > { %v548_v12 = vmul.f32 %v2685_v11, %v2685_v11 }
  0x8b   : > { %v549_v13 = vsel %vm535_vm0, %v548_v12, 0.0  ;;  %v610_v12 = vld [vmem:[%s3359_s4 + $0x128] sm:$0xff] }
  0x8c   : > { %550 = vadd.xlane.f32.xlu0 %v549_v13  ;;  %v609_v13 = vld [vmem:[%s3359_s4 + $0x120] sm:$0xff] }
  0xff   : > { %v551_v36 = vpop.xlane.xlu0 %550 }
 0x100   : > { %v552_v40 = vmul.f32 %v551_v36, %v2682_v8 }
 0x102   : > { %v553_v46 = vadd.f32 1e-12, %v552_v40 }
 0x104   : > { %2521 = vrsqrt.f32 %v553_v46  ;;  %vm560_vm3 = vweird.f32 %v553_v46 }
 0x10a   : > { %v2522_v49 = vpop.eup %2521 }
 0x10b   : > { %v555_v50 = vmul.f32 %v2522_v49, %v553_v46  ;;  %vm561_vm2 = vweird.f32 %v2522_v49  ;;  %v2491_v46 = vld [vmem:[%s3360_s5 + $0xb] ss:$0 sm:$0xff] }
 0x10c   : > { %vm562_vm4 = vmor %vm560_vm3, %vm561_vm2 }
 0x10d   : > { %v556_v51 = vmul.f32 %v2522_v49, %v555_v50 }
 0x10f   : > { %v557_v52 = vmul.f32 0.5, %v556_v51 }
 0x111   : > { %v558_v53 = vsub.f32 1.5, %v557_v52 }
 0x113   : > { %v559_v54 = vmul.f32 %v2522_v49, %v558_v53 }
 0x115   : > { %v563_v56 = vsel %vm562_vm4, %v2522_v49, %v559_v54  ;;  %v2917_v54 = vld [vmem:[%s526_s26] ss:$0 sm:$0xff] }
 0x116   : > { %v564_v58 = vmul.f32 %v563_v56, %v2685_v11  ;;  %v611_v11 = vld [vmem:[%s3359_s4 + $0x130] sm:$0xff] }
 0x118   : > { %v568_v59 = vmul.f32 %v2479_v55, %v564_v58 }
 0x11a   : > { %v2794_v60 = vadd.f32 %v2480_v57, %v568_v59 }
 0x11c   : > { %2324 = vmatmul.msk.f32.vlgmr.msra.gmra.mxu1 %vm535_vm0, %v2794_v60  ;;  %2326 = vmatmul.msk.f32.vlgmr.msra.gmra.mxu2 %vm535_vm0, %v2794_v60 }
 0x11d   : > { %2327 = vmatmul.msk.f32.vlgmr.msra.gmra.mxu3 %vm535_vm0, %v2794_v60  ;;  %2328 = vmatmul.msk.f32.vlgmr.msra.gmra.mxu0 %vm535_vm0, %v2794_v60 }
 0x11e   : > { %784 = vmatpush.msra.mxu1 %v596_v61  ;;  %884 = vmatpush.msra.mxu2 %v616_v62 }
 0x11f   : > { %904 = vmatpush.msra.mxu3 %v620_v63 }
 0x120   : > { %785 = vmatpush.msra.mxu1 %v595_v0  ;;  %885 = vmatpush.msra.mxu2 %v615_v1 }
 0x121   : > { %905 = vmatpush.msra.mxu3 %v619_v2 }
 0x122   : > { %786 = vmatpush.msra.mxu1 %v594_v3  ;;  %886 = vmatpush.msra.mxu2 %v614_v4 }
 0x123   : > { %906 = vmatpush.msra.mxu3 %v618_v5 }
 0x124   : > { %2325 = vmatmul.msk.f32.vlgmr.msrb.gmra.mxu1 %vm535_vm0, %v2794_v60  ;;  %2330 = vmatmul.msk.f32.vlgmr.msrb.gmra.mxu2 %vm535_vm0, %v2794_v60 }
 0x125   : > { %2331 = vmatmul.msk.f32.vlgmr.msrb.gmra.mxu3 %vm535_vm0, %v2794_v60  ;;  %2332 = vmatmul.msk.f32.vlgmr.msrb.gmra.mxu0 %vm535_vm0, %v2794_v60 }
 0x126   : > { %787 = vmatpush.msra.mxu1 %v593_v6  ;;  %887 = vmatpush.msra.mxu2 %v613_v7 }
 0x127   : > { %907 = vmatpush.msra.mxu3 %v617_v9 }
 0x128   : > { %864 = vmatpush.msrb.mxu1 %v612_v10 }
 0x12a   : > { %865 = vmatpush.msrb.mxu1 %v611_v11 }
 0x12c   : > { %866 = vmatpush.msrb.mxu1 %v610_v12  ;;  %2334 = vmatmul.msk.f32.vlgmr.msra.gmra.mxu2 %vm535_vm0, %v2794_v60 }
 0x12d   : > { %2329 = vmatmul.msk.f32.vlgmr.msra.gmra.mxu1 %vm535_vm0, %v2794_v60  ;;  %2335 = vmatmul.msk.f32.vlgmr.msra.gmra.mxu3 %vm535_vm0, %v2794_v60 }
 0x12e   : > { %867 = vmatpush.msrb.mxu1 %v609_v13 }
 0x135   : > { %2333 = vmatmul.msk.f32.vlgmr.msrb.gmra.mxu1 %vm535_vm0, %v2794_v60 }
 0x199   : > { %v689_v16 = vpop.f32.mrf.mxu1 }
 0x19a   : > { %v690_v17 = vadd.f32 %v2481_v14, %v689_v16  ;;  %v769_v18 = vpop.f32.mrf.mxu0 }
 0x19b   : > { %v770_v19 = vadd.f32 %v2482_v15, %v769_v18 }
 0x19c   : > { %v912_v20 = vmul.f32 0.35355338, %v690_v17 }
 0x19d   : > { %2336 = vmatpush.xpose.msk.msra.mxu0 %vm919_vm5, %v770_v19 }
 0x19f   : > { %v729_v21 = vpop.f32.mrf.mxu2 }
 0x1a0   : > { %v749_v23 = vpop.f32.mrf.mxu3  ;;  %2337 = vmatmul.msk.f32.vlgmr.msra.gmra.mxu0 %vm919_vm5, %v912_v20  ;;  %v730_v33 = vadd.f32 %v2483_v26, %v729_v21 }
 0x1a1   : > { %v709_v24 = vpop.f32.mrf.mxu1  ;;  %v750_v35 = vadd.f32 %v2484_v28, %v749_v23 }
 0x1a2   : > { %v849_v25 = vpop.f32.mrf.mxu0  ;;  %v710_v38 = vadd.f32 %v2485_v30, %v709_v24  ;;  %v914_v42 = vmul.f32 0.35355338, %v730_v33 }
 0x1a3   : > { %v850_v27 = vadd.f32 %v2486_v22, %v849_v25  ;;  %v915_v43 = vmul.f32 0.35355338, %v750_v35 }
 0x1a4   : > { %v913_v45 = vmul.f32 0.35355338, %v710_v38  ;;  %v1162_v38 = vld [vmem:[%s3361_s6 + $0x10] sm:$0xff] }
 0x1a5   : > { %1086 = vmatpush.msrb.mxu0 %v850_v27 }
 0x1a7   : > { %v809_v34 = vpop.f32.mrf.mxu2 }
 0x1a8   : > { %v810_v36 = vadd.f32 %v2487_v29, %v809_v34  ;;  %v829_v37 = vpop.f32.mrf.mxu3 }
 0x1a9   : > { %v830_v39 = vadd.f32 %v2488_v31, %v829_v37  ;;  %v1160_v37 = vld [vmem:[%s3361_s6] sm:$0xff] }
 0x1aa   : > { %v789_v40 = vpop.f32.mrf.mxu1  ;;  %2340 = vmatpush.xpose.msk.msrb.mxu2 %vm919_vm5, %v810_v36  ;;  %1182 = vmatpush.msra.mxu0 %v1160_v37 }
 0x1ab   : > { %v790_v41 = vadd.f32 %v2489_v32, %v789_v40  ;;  %2342 = vmatpush.xpose.msk.msrb.mxu3 %vm919_vm5, %v830_v39  ;;  %v1161_v39 = vld [vmem:[%s3361_s6 + $0x8] sm:$0xff]  ;;  %v1163_v40 = vld [vmem:[%s3361_s6 + $0x18] sm:$0xff] }
 0x1ad   : > { %2338 = vmatpush.xpose.msk.msra.mxu1 %vm919_vm5, %v790_v41  ;;  %2341 = vmatmul.msk.f32.vlgmr.msrb.gmra.mxu2 %vm919_vm5, %v914_v42 }
 0x1ae   : > { %2343 = vmatmul.msk.f32.vlgmr.msrb.gmra.mxu3 %vm919_vm5, %v915_v43 }
 0x1af   : > { %v889_v48 = vpop.f32.mrf.mxu2 }
 0x1b0   : > { %2339 = vmatmul.msk.f32.vlgmr.msra.gmra.mxu1 %vm919_vm5, %v913_v45  ;;  %v890_v49 = vadd.f32 %v2490_v44, %v889_v48  ;;  %v909_v50 = vpop.f32.mrf.mxu3 }
 0x1b1   : > { %v910_v51 = vadd.f32 %v2491_v46, %v909_v50 }
 0x1b2   : > { %v869_v52 = vpop.f32.mrf.mxu1  ;;  %1132 = vmatpush.msra.mxu2 %v890_v49 }
 0x1b3   : > { %v870_v53 = vadd.f32 %v2492_v47, %v869_v52  ;;  %1155 = vmatpush.msra.mxu3 %v910_v51 }
 0x1b4   : > { %1228 = vmatpush.msrb.mxu2 %v1162_v38 }
 0x1b5   : > { %1109 = vmatpush.msrb.mxu1 %v870_v53  ;;  %1251 = vmatpush.msrb.mxu3 %v1163_v40 }
 0x1b7   : > { %1205 = vmatpush.msra.mxu1 %v1161_v39 }
 0x21d   : > { %v943_v55 = vpop.f32.mrf.mxu0 }
 0x21e   : > { %v944_v56 = vadd.f32 %v2917_v54, %v943_v55  ;;  %v2493_v55 = vld [vmem:[%s3362_s7] ss:$0 sm:$0xff] }
 0x220   : > { %v1024_v57 = vsel %vm919_vm5, %v944_v56, -inf }
 0x221   : > { %1025 = vmax.xlane.f32.xlu2 %v1024_v57 }
 0x22d   : > { %v969_v58 = vpop.f32.mrf.mxu1 }
 0x22e   : > { %v970_v59 = vadd.f32 %v2917_v54, %v969_v58 }
 0x230   : > { %v1027_v61 = vsel %vm919_vm5, %v970_v59, -inf  ;;  %v995_v62 = vpop.f32.mrf.mxu2 }
 0x231   : > { %1028 = vmax.xlane.f32.xlu2 %v1027_v61  ;;  %v996_v63 = vadd.f32 %v2917_v54, %v995_v62  ;;  %v1021_v1 = vpop.f32.mrf.mxu3 }
 0x232   : > { %v1022_v2 = vadd.f32 %v2917_v54, %v1021_v1 }
 0x233   : > { %v1030_v0 = vsel %vm919_vm5, %v996_v63, -inf }
 0x234   : > { %1031 = vmax.xlane.f32.xlu1 %v1030_v0  ;;  %v1033_v3 = vsel %vm919_vm5, %v1022_v2, -inf }
 0x23c   : > { %1034 = vmax.xlane.f32.xlu1 %v1033_v3  ;;  %v1304_v3 = vld [vmem:[%s3365_s10 + $0x18] sm:$0xff] }
 0x294   : > { %v1026_v4 = vpop.xlane.xlu2 %1025 }
 0x295   : > { %v1036_v5 = vsub.f32 %v944_v56, %v1026_v4  ;;  %v1302_v4 = vld [vmem:[%s3365_s10 + $0x8] sm:$0xff] }
 0x297   : > { %v1040_v6 = vmul.f32 1.442695, %v1036_v5  ;;  %v1301_v5 = vld [vmem:[%s3365_s10] sm:$0xff] }
 0x299   : > { %2523 = vpow2.f32 %v1040_v6 }
 0x29f   : > { %v2524_v7 = vpop.eup %2523 }
 0x2a0   : > { %v1048_v9 = vsel %vm919_vm5, %v2524_v7, 0.0 }
 0x2a1   : > { %1049 = vadd.xlane.f32.xlu2 %v1048_v9 }
 0x2a4   : > { %v1029_v10 = vpop.xlane.xlu2 %1028 }
 0x2a5   : > { %v1037_v13 = vsub.f32 %v970_v59, %v1029_v10 }
 0x2a7   : > { %v1032_v11 = vpop.xlane.xlu1 %1031  ;;  %v1042_v15 = vmul.f32 1.442695, %v1037_v13 }
 0x2a8   : > { %v1038_v12 = vsub.f32 %v996_v63, %v1032_v11 }
 0x2aa   : > { %v1044_v14 = vmul.f32 1.442695, %v1038_v12 }
 0x2ac   : > { %2525 = vpow2.f32 %v1044_v14 }
 0x2ad   : > { %2527 = vpow2.f32 %v1042_v15 }
 0x2af   : > { %v1035_v16 = vpop.xlane.xlu1 %1034 }
 0x2b0   : > { %v1039_v17 = vsub.f32 %v1022_v2, %v1035_v16  ;;  %v2494_v16 = vld [vmem:[%s3363_s8] ss:$0 sm:$0xff] }
 0x2b2   : > { %v2526_v18 = vpop.eup %2525  ;;  %v1046_v19 = vmul.f32 1.442695, %v1039_v17 }
 0x2b3   : > { %v1054_v20 = vsel %vm919_vm5, %v2526_v18, 0.0  ;;  %v2528_v21 = vpop.eup %2527 }
 0x2b4   : > { %2529 = vpow2.f32 %v1046_v19  ;;  %1055 = vadd.xlane.f32.xlu0 %v1054_v20  ;;  %v1051_v24 = vsel %vm919_vm5, %v2528_v21, 0.0  ;;  %v2495_v19 = vld [vmem:[%s3364_s9] ss:$0 sm:$0xff] }
 0x2ba   : > { %v2530_v22 = vpop.eup %2529 }
 0x2bb   : > { %v1057_v23 = vsel %vm919_vm5, %v2530_v22, 0.0 }
 0x2bc   : > { %1058 = vadd.xlane.f32.xlu1 %v1057_v23  ;;  %1052 = vadd.xlane.f32.xlu0 %v1051_v24  ;;  %v1347_v23 = vld [vmem:[%s3367_s12 + $0x30] sm:$0xff]  ;;  %v1346_v24 = vld [vmem:[%s3367_s12 + $0x28] sm:$0xff] }
 0x314   : > { %v1050_v25 = vpop.xlane.xlu2 %1049 }
 0x315   : > { %2531 = vrcp.f32 %v1050_v25  ;;  %v1345_v25 = vld [vmem:[%s3367_s12 + $0x20] sm:$0xff] }
 0x31b   : > { %v2532_v26 = vpop.eup %2531 }
 0x31c   : > { %v1064_v27 = vmul.f32 %v2532_v26, %v2524_v7  ;;  %v1344_v26 = vld [vmem:[%s3367_s12 + $0x18] sm:$0xff] }
 0x31e   : > { %2344 = vmatmul.msk.f32.vlgmr.msrb.gmra.mxu0 %vm919_vm5, %v1064_v27  ;;  %v1343_v27 = vld [vmem:[%s3367_s12 + $0x10] sm:$0xff] }
 0x31f   : > { %1324 = vmatpush.msrb.mxu0 %v1304_v3  ;;  %v2358_v3 = vld [vmem:[%s3359_s4 + $0x1a0] sm:$0xff] }
 0x327   : > { %v1056_v28 = vpop.xlane.xlu0 %1055 }
 0x328   : > { %2533 = vrcp.f32 %v1056_v28  ;;  %v1342_v28 = vld [vmem:[%s3367_s12 + $0x8] sm:$0xff] }
 0x32e   : > { %v2534_v29 = vpop.eup %2533 }
 0x32f   : > { %v1066_v30 = vmul.f32 %v2534_v29, %v2526_v18  ;;  %v1059_v31 = vpop.xlane.xlu1 %1058  ;;  %v1053_v32 = vpop.xlane.xlu0 %1052  ;;  %v1341_v29 = vld [vmem:[%s3367_s12] sm:$0xff] }
 0x330   : > { %2535 = vrcp.f32 %v1059_v31 }
 0x331   : > { %2537 = vrcp.f32 %v1053_v32  ;;  %2346 = vmatmul.msk.f32.vlgmr.msra.gmra.mxu2 %vm919_vm5, %v1066_v30  ;;  %v2496_v30 = vld [vmem:[%s3366_s11] ss:$0 sm:$0xff] }
 0x336   : > { %v2536_v33 = vpop.eup %2535 }
 0x337   : > { %v2538_v34 = vpop.eup %2537  ;;  %v1067_v35 = vmul.f32 %v2536_v33, %v2530_v22  ;;  %v1348_v22 = vld [vmem:[%s3367_s12 + $0x38] sm:$0xff] }
 0x338   : > { %v1065_v36 = vmul.f32 %v2538_v34, %v2528_v21 }
 0x339   : > { %2347 = vmatmul.msk.f32.vlgmr.msra.gmra.mxu3 %vm919_vm5, %v1067_v35 }
 0x33a   : > { %2345 = vmatmul.msk.f32.vlgmr.msrb.gmra.mxu1 %vm919_vm5, %v1065_v36 }
 0x33b   : > { %1365 = vmatpush.msrb.mxu1 %v1348_v22 }
 0x33d   : > { %1366 = vmatpush.msrb.mxu1 %v1347_v23  ;;  %v2374_v23 = vld [vmem:[%s3359_s4 + $0x220] sm:$0xff] }
 0x33f   : > { %1367 = vmatpush.msrb.mxu1 %v1346_v24  ;;  %v2394_v24 = vld [vmem:[%s3359_s4 + $0x2c0] sm:$0xff] }
 0x341   : > { %1368 = vmatpush.msrb.mxu1 %v1345_v25 }
 0x343   : > { %1369 = vmatpush.msrb.mxu1 %v1344_v26 }
 0x345   : > { %1370 = vmatpush.msrb.mxu1 %v1343_v27 }
 0x347   : > { %1371 = vmatpush.msrb.mxu1 %v1342_v28 }
 0x349   : > { %1372 = vmatpush.msrb.mxu1 %v1341_v29 }
 0x39b   : > { %v1088_v41 = vpop.f32.mrf.mxu0 }
 0x39c   : > { %2348 = vmatmul.msk.f32.vlgmr.msra.gmra.mxu0 %vm919_vm5, %v1088_v41 }
 0x3b4   : > { %v1134_v42 = vpop.f32.mrf.mxu2 }
 0x3b5   : > { %2350 = vmatmul.msk.f32.vlgmr.msrb.gmra.mxu2 %vm919_vm5, %v1134_v42  ;;  %v2497_v42 = vld [vmem:[%s3368_s13] ss:$0 sm:$0xff] }
 0x3b7   : > { %v1111_v43 = vpop.f32.mrf.mxu1 }
 0x3b8   : > { %2349 = vmatmul.msk.f32.vlgmr.msra.gmra.mxu1 %vm919_vm5, %v1111_v43 }
 0x3bc   : > { %v1157_v44 = vpop.f32.mrf.mxu3 }
 0x3bd   : > { %2351 = vmatmul.msk.f32.vlgmr.msrb.gmra.mxu3 %vm919_vm5, %v1157_v44 }
 0x419   : > { %v1184_v46 = vpop.f32.mrf.mxu0 }
 0x41a   : > { %v1256_v49 = vsel %vm535_vm0, %v1184_v46, 0.0 }
 0x435   : > { %v1207_v45 = vpop.f32.mrf.mxu1 }
 0x436   : > { %v1257_v48 = vsel %vm535_vm0, %v1207_v45, 0.0 }
 0x437   : > { %v1258_v51 = vadd.f32 %v1257_v48, %v1256_v49 }
 0x438   : > { %v1230_v47 = vpop.f32.mrf.mxu2 }
 0x439   : > { %v1259_v50 = vsel %vm535_vm0, %v1230_v47, 0.0 }
 0x43a   : > { %v1260_v52 = vadd.f32 %v1259_v50, %v1258_v51 }
 0x440   : > { %v1253_v53 = vpop.f32.mrf.mxu3 }
 0x441   : > { %v1261_v56 = vsel %vm535_vm0, %v1253_v53, 0.0  ;;  %v2361_v53 = vld [vmem:[%s3359_s4 + $0x1b8] sm:$0xff] }
 0x442   : > { %v1262_v57 = vadd.f32 %v1261_v56, %v1260_v52  ;;  %v2357_v52 = vld [vmem:[%s3359_s4 + $0x198] sm:$0xff]  ;;  %1543 = vmatpush.msra.mxu3 %v2361_v53  ;;  %v2500_v53 = vld [vmem:[%s3360_s5 + $0xe] ss:$0 sm:$0xff] }
 0x443   : > { %1523 = vmatpush.msra.mxu2 %v2357_v52  ;;  %v2381_v56 = vld [vmem:[%s3359_s4 + $0x258] sm:$0xff]  ;;  %v2398_v52 = vld [vmem:[%s3359_s4 + $0x2e0] sm:$0xff] }
 0x444   : > { %v1267_v58 = vadd.f32 %v2493_v55, %v1262_v57  ;;  %v2365_v55 = vld [vmem:[%s3359_s4 + $0x1d8] sm:$0xff]  ;;  %1643 = vmatpush.msra.mxu1 %v2381_v56  ;;  %v2356_v57 = vld [vmem:[%s3359_s4 + $0x190] sm:$0xff] }
 0x445   : > { %1524 = vmatpush.msra.mxu2 %v2356_v57 }
 0x446   : > { %v1268_v59 = vadd.f32 %v1267_v58, %v2794_v60  ;;  %v1303_v60 = vld [vmem:[%s3365_s10 + $0x10] sm:$0xff] }
 0x447   : > { %1325 = vmatpush.msrb.mxu0 %v1303_v60  ;;  %v2360_v58 = vld [vmem:[%s3359_s4 + $0x1b0] sm:$0xff]  ;;  %v2362_v60 = vld [vmem:[%s3359_s4 + $0x1c0] sm:$0xff] }
 0x448   : > { %v1271_v61 = vsel %vm535_vm0, %v1268_v59, 0.0  ;;  %1544 = vmatpush.msra.mxu3 %v2360_v58 }
 0x449   : > { %1272 = vadd.xlane.f32.xlu1 %v1271_v61  ;;  %1326 = vmatpush.msrb.mxu0 %v1302_v4  ;;  %v2380_v61 = vld [vmem:[%s3359_s4 + $0x250] sm:$0xff]  ;;  %v2378_v4 = vld [vmem:[%s3359_s4 + $0x240] sm:$0xff] }
 0x44a   : > { %1644 = vmatpush.msra.mxu1 %v2380_v61 }
 0x44b   : > { %1327 = vmatpush.msrb.mxu0 %v1301_v5  ;;  %v2369_v5 = vld [vmem:[%s3359_s4 + $0x1f8] sm:$0xff] }
 0x44d   : > { %1563 = vmatpush.msra.mxu0 %v2365_v55  ;;  %v2501_v55 = vld [vmem:[%s3360_s5 + $0x12] ss:$0 sm:$0xff] }
 0x4bc   : > { %v1273_v62 = vpop.xlane.xlu1 %1272 }
 0x4bd   : > { %v1274_v63 = vmul.f32 %v1273_v62, %v2682_v8  ;;  %v2355_v62 = vld [vmem:[%s3359_s4 + $0x188] sm:$0xff] }
 0x4be   : > { %1525 = vmatpush.msra.mxu2 %v2355_v62  ;;  %v2503_v62 = vld [vmem:[%s3360_s5 + $0xd] ss:$0 sm:$0xff] }
 0x4bf   : > { %v1275_v0 = vsub.f32 %v1268_v59, %v1274_v63  ;;  %v2364_v59 = vld [vmem:[%s3359_s4 + $0x1d0] sm:$0xff]  ;;  %v2359_v63 = vld [vmem:[%s3359_s4 + $0x1a8] sm:$0xff] }
 0x4c0   : > { %1564 = vmatpush.msra.mxu0 %v2364_v59  ;;  %1545 = vmatpush.msra.mxu3 %v2359_v63 }
 0x4c1   : > { %v1276_v1 = vmul.f32 %v1275_v0, %v1275_v0 }
 0x4c2   : > { %1546 = vmatpush.msra.mxu3 %v2358_v3 }
 0x4c3   : > { %v1277_v2 = vsel %vm535_vm0, %v1276_v1, 0.0  ;;  %v2379_v1 = vld [vmem:[%s3359_s4 + $0x248] sm:$0xff] }
 0x4c4   : > { %1278 = vadd.xlane.f32.xlu2 %v1277_v2  ;;  %v2354_v2 = vld [vmem:[%s3359_s4 + $0x180] sm:$0xff]  ;;  %1645 = vmatpush.msra.mxu1 %v2379_v1  ;;  %v2504_v1 = vld [vmem:[%s3360_s5 + $0x11] ss:$0 sm:$0xff] }
 0x4c5   : > { %1526 = vmatpush.msra.mxu2 %v2354_v2  ;;  %v2505_v2 = vld [vmem:[%s3360_s5 + $0x16] ss:$0 sm:$0xff] }
 0x4c6   : > { %1646 = vmatpush.msra.mxu1 %v2378_v4 }
 0x4c7   : > { %1583 = vmatpush.msrb.mxu2 %v2369_v5  ;;  %v2502_v5 = vld [vmem:[%s3360_s5 + $0xc] ss:$0 sm:$0xff] }
 0x537   : > { %v1279_v6 = vpop.xlane.xlu2 %1278 }
 0x538   : > { %v1280_v7 = vmul.f32 %v1279_v6, %v2682_v8  ;;  %v2373_v6 = vld [vmem:[%s3359_s4 + $0x218] sm:$0xff] }
 0x539   : > { %1603 = vmatpush.msrb.mxu3 %v2373_v6 }
 0x53a   : > { %v1281_v9 = vadd.f32 1e-12, %v1280_v7  ;;  %v2377_v7 = vld [vmem:[%s3359_s4 + $0x238] sm:$0xff] }
 0x53c   : > { %2539 = vrsqrt.f32 %v1281_v9  ;;  %vm1288_vm7 = vweird.f32 %v1281_v9 }
 0x542   : > { %v2540_v10 = vpop.eup %2539 }
 0x543   : > { %v1283_v11 = vmul.f32 %v2540_v10, %v1281_v9  ;;  %vm1289_vm6 = vweird.f32 %v2540_v10  ;;  %v2397_v9 = vld [vmem:[%s3359_s4 + $0x2d8] sm:$0xff] }
 0x544   : > { %vm1290_vm8 = vmor %vm1288_vm7, %vm1289_vm6 }
 0x545   : > { %v1284_v12 = vmul.f32 %v2540_v10, %v1283_v11  ;;  %v2372_v11 = vld [vmem:[%s3359_s4 + $0x210] sm:$0xff] }
 0x546   : > { %1604 = vmatpush.msrb.mxu3 %v2372_v11 }
 0x547   : > { %v1285_v13 = vmul.f32 0.5, %v1284_v12 }
 0x549   : > { %v1286_v14 = vsub.f32 1.5, %v1285_v13  ;;  %v2376_v13 = vld [vmem:[%s3359_s4 + $0x230] sm:$0xff] }
 0x54b   : > { %v1287_v15 = vmul.f32 %v2540_v10, %v1286_v14  ;;  %v2396_v14 = vld [vmem:[%s3359_s4 + $0x2d0] sm:$0xff] }
 0x54d   : > { %v1291_v17 = vsel %vm1290_vm8, %v2540_v10, %v1287_v15  ;;  %v2368_v10 = vld [vmem:[%s3359_s4 + $0x1f0] sm:$0xff]  ;;  %v2367_v15 = vld [vmem:[%s3359_s4 + $0x1e8] sm:$0xff] }
 0x54e   : > { %v1292_v18 = vmul.f32 %v1291_v17, %v1275_v0  ;;  %v2363_v0 = vld [vmem:[%s3359_s4 + $0x1c8] sm:$0xff]  ;;  %1584 = vmatpush.msrb.mxu2 %v2368_v10 }
 0x54f   : > { %1565 = vmatpush.msra.mxu0 %v2363_v0  ;;  %v2371_v17 = vld [vmem:[%s3359_s4 + $0x208] sm:$0xff] }
 0x550   : > { %v1296_v20 = vmul.f32 %v2494_v16, %v1292_v18  ;;  %v2375_v18 = vld [vmem:[%s3359_s4 + $0x228] sm:$0xff]  ;;  %1585 = vmatpush.msrb.mxu2 %v2367_v15  ;;  %1605 = vmatpush.msrb.mxu3 %v2371_v17 }
 0x551   : > { %1566 = vmatpush.msra.mxu0 %v2362_v60 }
 0x552   : > { %v1300_v21 = vadd.f32 %v2495_v19, %v1296_v20  ;;  %v2395_v19 = vld [vmem:[%s3359_s4 + $0x2c8] sm:$0xff]  ;;  %v2366_v20 = vld [vmem:[%s3359_s4 + $0x1e0] sm:$0xff] }
 0x553   : > { %1586 = vmatpush.msrb.mxu2 %v2366_v20  ;;  %v2509_v20 = vld [vmem:[%s3360_s5 + $0x13] ss:$0 sm:$0xff] }
 0x554   : > { %2352 = vmatmul.msk.f32.vlgmr.msrb.gmra.mxu0 %vm535_vm0, %v1300_v21 }
 0x555   : > { %1623 = vmatpush.msrb.mxu0 %v2377_v7 }
 0x557   : > { %1624 = vmatpush.msrb.mxu0 %v2376_v13 }
 0x559   : > { %1625 = vmatpush.msrb.mxu0 %v2375_v18  ;;  %v2506_v18 = vld [vmem:[%s3360_s5 + $0xf] ss:$0 sm:$0xff] }
 0x55b   : > { %1626 = vmatpush.msrb.mxu0 %v2374_v23 }
 0x5d1   : > { %v1329_v31 = vpop.f32.mrf.mxu0 }
 0x5d2   : > { %v1330_v32 = vadd.f32 %v2496_v30, %v1329_v31  ;;  %v2498_v31 = vld [vmem:[%s3369_s14] ss:$0 sm:$0xff] }
 0x5d4   : > { %v1332_v33 = vmul.f32 %v1330_v32, %v1330_v32 }
 0x5d6   : > { %v1333_v34 = vmul.f32 %v1332_v33, %v1330_v32  ;;  %v2499_v33 = vld [vmem:[%s3370_s15] ss:$0 sm:$0xff] }
 0x5d8   : > { %v1334_v35 = vmul.f32 0.044715, %v1333_v34 }
 0x5da   : > { %v1335_v36 = vadd.f32 %v1334_v35, %v1330_v32 }
 0x5dc   : > { %v1336_v37 = vmul.f32 0.7978846, %v1335_v36 }
 0x5de   : > { %2541 = vtanh.f32 %v1336_v37  ;;  %v2385_v37 = vld [vmem:[%s3359_s4 + $0x278] sm:$0xff] }
 0x5e4   : > { %v2542_v38 = vpop.eup %2541 }
 0x5e5   : > { %v1338_v39 = vadd.f32 1.0, %v2542_v38  ;;  %v2389_v38 = vld [vmem:[%s3359_s4 + $0x298] sm:$0xff] }
 0x5e7   : > { %v1339_v40 = vmul.f32 0.5, %v1338_v39  ;;  %v2393_v39 = vld [vmem:[%s3359_s4 + $0x2b8] sm:$0xff] }
 0x5e9   : > { %v1340_v41 = vmul.f32 %v1339_v40, %v1330_v32  ;;  %v2384_v40 = vld [vmem:[%s3359_s4 + $0x270] sm:$0xff] }
 0x5eb   : > { %2353 = vmatmul.msk.f32.vlgmr.msrb.gmra.mxu1 %vm1353_vm9, %v1340_v41  ;;  %v2388_v41 = vld [vmem:[%s3359_s4 + $0x290] sm:$0xff] }
 0x5ec   : > { %1723 = vmatpush.msrb.mxu1 %v2397_v9  ;;  %v2507_v9 = vld [vmem:[%s3360_s5 + $0x10] ss:$0 sm:$0xff] }
 0x5ee   : > { %1724 = vmatpush.msrb.mxu1 %v2396_v14  ;;  %v2508_v14 = vld [vmem:[%s3360_s5 + $0x15] ss:$0 sm:$0xff] }
 0x5f0   : > { %1725 = vmatpush.msrb.mxu1 %v2395_v19 }
 0x5f2   : > { %1726 = vmatpush.msrb.mxu1 %v2394_v24 }
 0x668   : > { %v1374_v43 = vpop.f32.mrf.mxu1 }
 0x669   : > { %v1375_v44 = vadd.f32 %v2497_v42, %v1374_v43  ;;  %v2392_v42 = vld [vmem:[%s3359_s4 + $0x2b0] sm:$0xff]  ;;  %v2383_v43 = vld [vmem:[%s3359_s4 + $0x268] sm:$0xff] }
 0x66b   : > { %v1377_v45 = vadd.f32 %v1375_v44, %v1300_v21  ;;  %v2370_v21 = vld [vmem:[%s3359_s4 + $0x200] sm:$0xff]  ;;  %v2387_v44 = vld [vmem:[%s3359_s4 + $0x288] sm:$0xff] }
 0x66c   : > { %1606 = vmatpush.msrb.mxu3 %v2370_v21  ;;  %v2510_v21 = vld [vmem:[%s3360_s5 + $0x14] ss:$0 sm:$0xff] }
 0x66d   : > { %v1380_v46 = vsel %vm535_vm0, %v1377_v45, 0.0 }
 0x66e   : > { %1381 = vadd.xlane.f32.xlu0 %v1380_v46  ;;  %v2382_v46 = vld [vmem:[%s3359_s4 + $0x260] sm:$0xff] }
 0x6e1   : > { %v1382_v47 = vpop.xlane.xlu0 %1381 }
 0x6e2   : > { %v1383_v48 = vmul.f32 %v1382_v47, %v2682_v8  ;;  %v2386_v47 = vld [vmem:[%s3359_s4 + $0x280] sm:$0xff] }
 0x6e4   : > { %v3015_v49 = vsub.f32 %v1377_v45, %v1383_v48  ;;  %v2391_v45 = vld [vmem:[%s3359_s4 + $0x2a8] sm:$0xff]  ;;  %v2390_v48 = vld [vmem:[%s3359_s4 + $0x2a0] sm:$0xff] }
 0x6e6   : > { %v1385_v50 = vmul.f32 %v3015_v49, %v3015_v49 }
 0x6e8   : > { %v1386_v51 = vsel %vm535_vm0, %v1385_v50, 0.0  ;;  %v2400_v50 = vld [vmem:[%s3359_s4 + $0x2f0] sm:$0xff] }
 0x6e9   : > { %1387 = vadd.xlane.f32.xlu1 %v1386_v51  ;;  %v2399_v51 = vld [vmem:[%s3359_s4 + $0x2e8] sm:$0xff] }
 0x75c   : > { %v1388_v12 = vpop.xlane.xlu1 %1387 }
 0x75d   : > { %v1389_v16 = vmul.f32 %v1388_v12, %v2682_v8 }
 0x75f   : > { %v1390_v22 = vadd.f32 1e-12, %v1389_v16 }
 0x761   : > { %2543 = vrsqrt.f32 %v1390_v22  ;;  %vm1397_vm11 = vweird.f32 %v1390_v22 }
 0x767   : > { %v2544_v25 = vpop.eup %2543 }
 0x768   : > { %v1392_v26 = vmul.f32 %v2544_v25, %v1390_v22  ;;  %vm1398_vm10 = vweird.f32 %v2544_v25 }
 0x769   : > { %vm1399_vm12 = vmor %vm1397_vm11, %vm1398_vm10 }
 0x76a   : > { %v1393_v27 = vmul.f32 %v2544_v25, %v1392_v26 }
 0x76c   : > { %v1394_v28 = vmul.f32 0.5, %v1393_v27 }
 0x76e   : > { %v1395_v29 = vsub.f32 1.5, %v1394_v28  ;;  %v2511_v28 = vld [vmem:[%s3360_s5 + $0x17] ss:$0 sm:$0xff] }
 0x770   : > { %v1396_v30 = vmul.f32 %v2544_v25, %v1395_v29 }
 0x772   : > { %v1400_v32 = vsel %vm1399_vm12, %v2544_v25, %v1396_v30 }
 0x773   : > { %v1401_v34 = vmul.f32 %v1400_v32, %v3015_v49  ;;  %v2401_v49 = vld [vmem:[%s3359_s4 + $0x2f8] sm:$0xff] }
 0x775   : > { %v1405_v35 = vmul.f32 %v2498_v31, %v1401_v34 }
 0x777   : > { %v3124_v36 = vadd.f32 %v2499_v33, %v1405_v35 }
 0x779   : > { %2414 = vmatmul.msk.f32.vlgmr.msra.gmra.mxu2 %vm535_vm0, %v3124_v36  ;;  %2415 = vmatmul.msk.f32.vlgmr.msra.gmra.mxu3 %vm535_vm0, %v3124_v36 }
 0x77a   : > { %2416 = vmatmul.msk.f32.vlgmr.msra.gmra.mxu0 %vm535_vm0, %v3124_v36  ;;  %2420 = vmatmul.msk.f32.vlgmr.msra.gmra.mxu1 %vm535_vm0, %v3124_v36 }
 0x77b   : > { %1663 = vmatpush.msra.mxu2 %v2385_v37  ;;  %1683 = vmatpush.msra.mxu3 %v2389_v38 }
 0x77c   : > { %1703 = vmatpush.msra.mxu0 %v2393_v39 }
 0x77d   : > { %1664 = vmatpush.msra.mxu2 %v2384_v40  ;;  %1684 = vmatpush.msra.mxu3 %v2388_v41 }
 0x77e   : > { %1704 = vmatpush.msra.mxu0 %v2392_v42 }
 0x77f   : > { %1665 = vmatpush.msra.mxu2 %v2383_v43  ;;  %1685 = vmatpush.msra.mxu3 %v2387_v44 }
 0x780   : > { %1705 = vmatpush.msra.mxu0 %v2391_v45 }
 0x781   : > { %2417 = vmatmul.msk.f32.vlgmr.msrb.gmra.mxu2 %vm535_vm0, %v3124_v36  ;;  %2418 = vmatmul.msk.f32.vlgmr.msrb.gmra.mxu3 %vm535_vm0, %v3124_v36 }
 0x782   : > { %2419 = vmatmul.msk.f32.vlgmr.msrb.gmra.mxu0 %vm535_vm0, %v3124_v36  ;;  %2424 = vmatmul.msk.f32.vlgmr.msrb.gmra.mxu1 %vm535_vm0, %v3124_v36 }
 0x783   : > { %1666 = vmatpush.msra.mxu2 %v2382_v46  ;;  %1686 = vmatpush.msra.mxu3 %v2386_v47 }
 0x784   : > { %1706 = vmatpush.msra.mxu0 %v2390_v48 }
 0x785   : > { %1743 = vmatpush.msrb.mxu2 %v2401_v49 }
 0x787   : > { %1744 = vmatpush.msrb.mxu2 %v2400_v50 }
 0x789   : > { %1745 = vmatpush.msrb.mxu2 %v2399_v51  ;;  %2422 = vmatmul.msk.f32.vlgmr.msra.gmra.mxu3 %vm535_vm0, %v3124_v36 }
 0x78a   : > { %2421 = vmatmul.msk.f32.vlgmr.msra.gmra.mxu2 %vm535_vm0, %v3124_v36  ;;  %2423 = vmatmul.msk.f32.vlgmr.msra.gmra.mxu0 %vm535_vm0, %v3124_v36 }
 0x78b   : > { %1746 = vmatpush.msrb.mxu2 %v2398_v52 }
 0x792   : > { %2425 = vmatmul.msk.f32.vlgmr.msrb.gmra.mxu2 %vm535_vm0, %v3124_v36 }
 0x7f7   : > { %v1568_v56 = vpop.f32.mrf.mxu0  ;;  %v1648_v57 = vpop.f32.mrf.mxu1 }
 0x7f8   : > { %v1569_v58 = vadd.f32 %v2500_v53, %v1568_v56  ;;  %v1649_v59 = vadd.f32 %v2501_v55, %v1648_v57 }
 0x7fa   : > { %v1753_v61 = vmul.f32 0.35355338, %v1569_v58  ;;  %2430 = vmatpush.xpose.msk.msra.mxu1 %vm919_vm5, %v1649_v59 }
 0x7fc   : > { %v1528_v63 = vpop.f32.mrf.mxu2  ;;  %v1548_v0 = vpop.f32.mrf.mxu3 }
 0x7fd   : > { %2431 = vmatmul.msk.f32.vlgmr.msra.gmra.mxu1 %vm919_vm5, %v1753_v61  ;;  %v1549_v3 = vadd.f32 %v2503_v62, %v1548_v0  ;;  %v1529_v11 = vadd.f32 %v2502_v5, %v1528_v63 }
 0x7ff   : > { %v1628_v60 = vpop.f32.mrf.mxu0  ;;  %v1728_v4 = vpop.f32.mrf.mxu1  ;;  %v1752_v10 = vmul.f32 0.35355338, %v1549_v3  ;;  %v1751_v17 = vmul.f32 0.35355338, %v1529_v11 }
 0x800   : > { %v1629_v6 = vadd.f32 %v2504_v1, %v1628_v60  ;;  %v1729_v7 = vadd.f32 %v2505_v2, %v1728_v4 }
 0x802   : > { %2428 = vmatpush.xpose.msk.msrb.mxu0 %vm919_vm5, %v1629_v6  ;;  %1967 = vmatpush.msrb.mxu1 %v1729_v7 }
 0x804   : > { %v1588_v12 = vpop.f32.mrf.mxu2  ;;  %v1608_v13 = vpop.f32.mrf.mxu3 }
 0x805   : > { %v1609_v15 = vadd.f32 %v2507_v9, %v1608_v13  ;;  %2429 = vmatmul.msk.f32.vlgmr.msrb.gmra.mxu0 %vm919_vm5, %v1752_v10  ;;  %v1589_v22 = vadd.f32 %v2506_v18, %v1588_v12  ;;  %v2439_v13 = vld [vmem:[%s3361_s6 + $0x28] sm:$0xff] }
 0x807   : > { %v1708_v16 = vpop.f32.mrf.mxu0  ;;  %2426 = vmatpush.xpose.msk.msrb.mxu3 %vm919_vm5, %v1609_v15  ;;  %v1754_v27 = vmul.f32 0.35355338, %v1589_v22  ;;  %v2440_v15 = vld [vmem:[%s3361_s6 + $0x30] sm:$0xff] }
 0x808   : > { %v1709_v19 = vadd.f32 %v2508_v14, %v1708_v16  ;;  %v2438_v14 = vld [vmem:[%s3361_s6 + $0x20] sm:$0xff]  ;;  %2064 = vmatpush.msra.mxu1 %v2440_v15  ;;  %v2441_v16 = vld [vmem:[%s3361_s6 + $0x38] sm:$0xff] }
 0x80a   : > { %1944 = vmatpush.msra.mxu0 %v1709_v19  ;;  %2427 = vmatmul.msk.f32.vlgmr.msrb.gmra.mxu3 %vm919_vm5, %v1751_v17 }
 0x80c   : > { %v1688_v24 = vpop.f32.mrf.mxu3  ;;  %2041 = vmatpush.msrb.mxu0 %v2439_v13 }
 0x80d   : > { %v1668_v23 = vpop.f32.mrf.mxu2  ;;  %v1689_v26 = vadd.f32 %v2510_v21, %v1688_v24 }
 0x80e   : > { %v1669_v25 = vadd.f32 %v2509_v20, %v1668_v23 }
 0x80f   : > { %1921 = vmatpush.msra.mxu3 %v1689_v26 }
 0x810   : > { %2432 = vmatpush.xpose.msk.msra.mxu2 %vm919_vm5, %v1669_v25 }
 0x811   : > { %2018 = vmatpush.msrb.mxu3 %v2438_v14 }
 0x813   : > { %2433 = vmatmul.msk.f32.vlgmr.msra.gmra.mxu2 %vm919_vm5, %v1754_v27 }
 0x815   : > { %v1748_v29 = vpop.f32.mrf.mxu2 }
 0x816   : > { %v1749_v30 = vadd.f32 %v2511_v28, %v1748_v29 }
 0x818   : > { %1990 = vmatpush.msrb.mxu2 %v1749_v30  ;;  %v2512_v30 = vld [vmem:[%s3362_s7 + $0x1] ss:$0 sm:$0xff] }
 0x81a   : > { %2087 = vmatpush.msra.mxu2 %v2441_v16 }
 0x87a   : > { %v1830_v38 = vpop.f32.mrf.mxu1 }
 0x87b   : > { %v1831_v39 = vadd.f32 %v2917_v54, %v1830_v38 }
 0x87d   : > { %v1865_v43 = vsel %vm919_vm5, %v1831_v39, -inf }
 0x882   : > { %v1804_v31 = vpop.f32.mrf.mxu0 }
 0x883   : > { %v1805_v32 = vadd.f32 %v2917_v54, %v1804_v31 }
 0x885   : > { %v1862_v33 = vsel %vm919_vm5, %v1805_v32, -inf }
 0x886   : > { %1863 = vmax.xlane.f32.xlu1 %v1862_v33 }
 0x88d   : > { %v1778_v34 = vpop.f32.mrf.mxu3 }
 0x88e   : > { %v1779_v35 = vadd.f32 %v2917_v54, %v1778_v34 }
 0x890   : > { %v1859_v37 = vsel %vm919_vm5, %v1779_v35, -inf }
 0x891   : > { %1860 = vmax.xlane.f32.xlu2 %v1859_v37 }
 0x896   : > { %v1856_v40 = vpop.f32.mrf.mxu2 }
 0x897   : > { %v1857_v41 = vadd.f32 %v2917_v54, %v1856_v40 }
 0x899   : > { %v1868_v42 = vsel %vm919_vm5, %v1857_v41, -inf  ;;  %1866 = vmax.xlane.f32.xlu2 %v1865_v43  ;;  %v2450_v43 = vld [vmem:[%s3365_s10 + $0x28] sm:$0xff] }
 0x89a   : > { %1869 = vmax.xlane.f32.xlu0 %v1868_v42  ;;  %v2452_v42 = vld [vmem:[%s3365_s10 + $0x38] sm:$0xff] }
 0x8f9   : > { %v1864_v44 = vpop.xlane.xlu1 %1863 }
 0x8fa   : > { %v1872_v45 = vsub.f32 %v1805_v32, %v1864_v44  ;;  %v2449_v44 = vld [vmem:[%s3365_s10 + $0x20] sm:$0xff] }
 0x8fc   : > { %v1877_v46 = vmul.f32 1.442695, %v1872_v45 }
 0x8fe   : > { %2545 = vpow2.f32 %v1877_v46 }
 0x904   : > { %v2546_v47 = vpop.eup %2545  ;;  %v1861_v48 = vpop.xlane.xlu2 %1860 }
 0x905   : > { %v1871_v49 = vsub.f32 %v1779_v35, %v1861_v48  ;;  %v1886_v50 = vsel %vm919_vm5, %v2546_v47, 0.0 }
 0x906   : > { %1887 = vadd.xlane.f32.xlu2 %v1886_v50 }
 0x907   : > { %v1875_v51 = vmul.f32 1.442695, %v1871_v49 }
 0x909   : > { %2547 = vpow2.f32 %v1875_v51 }
 0x90c   : > { %v1867_v54 = vpop.xlane.xlu2 %1866 }
 0x90d   : > { %v1870_v52 = vpop.xlane.xlu0 %1869  ;;  %v1873_v55 = vsub.f32 %v1831_v39, %v1867_v54 }
 0x90e   : > { %v1874_v53 = vsub.f32 %v1857_v41, %v1870_v52 }
 0x90f   : > { %v2548_v56 = vpop.eup %2547  ;;  %v1879_v58 = vmul.f32 1.442695, %v1873_v55 }
 0x910   : > { %v1881_v57 = vmul.f32 1.442695, %v1874_v53  ;;  %v1883_v59 = vsel %vm919_vm5, %v2548_v56, 0.0  ;;  %v2513_v53 = vld [vmem:[%s3363_s8 + $0x1] ss:$0 sm:$0xff] }
 0x911   : > { %1884 = vadd.xlane.f32.xlu0 %v1883_v59 }
 0x912   : > { %2549 = vpow2.f32 %v1881_v57  ;;  %v2514_v57 = vld [vmem:[%s3364_s9 + $0x1] ss:$0 sm:$0xff] }
 0x913   : > { %2551 = vpow2.f32 %v1879_v58 }
 0x918   : > { %v2550_v61 = vpop.eup %2549 }
 0x919   : > { %v2552_v62 = vpop.eup %2551  ;;  %v1892_v63 = vsel %vm919_vm5, %v2550_v61, 0.0 }
 0x91a   : > { %1893 = vadd.xlane.f32.xlu1 %v1892_v63  ;;  %v1889_v0 = vsel %vm919_vm5, %v2552_v62, 0.0  ;;  %v2460_v63 = vld [vmem:[%s3367_s12 + $0x68] sm:$0xff] }
 0x91b   : > { %1890 = vadd.xlane.f32.xlu0 %v1889_v0  ;;  %v2459_v0 = vld [vmem:[%s3367_s12 + $0x60] sm:$0xff] }
 0x979   : > { %v1888_v1 = vpop.xlane.xlu2 %1887 }
 0x97a   : > { %2553 = vrcp.f32 %v1888_v1  ;;  %v2458_v1 = vld [vmem:[%s3367_s12 + $0x58] sm:$0xff] }
 0x980   : > { %v2554_v2 = vpop.eup %2553 }
 0x981   : > { %v1900_v3 = vmul.f32 %v2554_v2, %v2546_v47  ;;  %v2457_v2 = vld [vmem:[%s3367_s12 + $0x50] sm:$0xff] }
 0x983   : > { %2435 = vmatmul.msk.f32.vlgmr.msra.gmra.mxu0 %vm919_vm5, %v1900_v3  ;;  %v2456_v3 = vld [vmem:[%s3367_s12 + $0x48] sm:$0xff] }
 0x984   : > { %v1885_v60 = vpop.xlane.xlu0 %1884 }
 0x985   : > { %2555 = vrcp.f32 %v1885_v60  ;;  %v2455_v60 = vld [vmem:[%s3367_s12 + $0x40] sm:$0xff] }
 0x98b   : > { %v2556_v4 = vpop.eup %2555 }
 0x98c   : > { %v1899_v5 = vmul.f32 %v2556_v4, %v2548_v56  ;;  %v2515_v4 = vld [vmem:[%s3366_s11 + $0x1] ss:$0 sm:$0xff] }
 0x98d   : > { %v1894_v6 = vpop.xlane.xlu1 %1893 }
 0x98e   : > { %2557 = vrcp.f32 %v1894_v6  ;;  %v1891_v7 = vpop.xlane.xlu0 %1890  ;;  %2434 = vmatmul.msk.f32.vlgmr.msra.gmra.mxu3 %vm919_vm5, %v1899_v5 }
 0x98f   : > { %2559 = vrcp.f32 %v1891_v7  ;;  %2165 = vmatpush.msra.mxu3 %v2452_v42 }
 0x994   : > { %v2558_v9 = vpop.eup %2557 }
 0x995   : > { %v2560_v10 = vpop.eup %2559  ;;  %v1902_v11 = vmul.f32 %v2558_v9, %v2550_v61  ;;  %v2462_v61 = vld [vmem:[%s3367_s12 + $0x78] sm:$0xff] }
 0x996   : > { %v1901_v12 = vmul.f32 %v2560_v10, %v2552_v62  ;;  %2207 = vmatpush.msra.mxu0 %v2462_v61  ;;  %v2461_v62 = vld [vmem:[%s3367_s12 + $0x70] sm:$0xff] }
 0x997   : > { %2437 = vmatmul.msk.f32.vlgmr.msrb.gmra.mxu2 %vm919_vm5, %v1902_v11 }
 0x998   : > { %2436 = vmatmul.msk.f32.vlgmr.msrb.gmra.mxu1 %vm919_vm5, %v1901_v12  ;;  %2208 = vmatpush.msra.mxu0 %v2461_v62 }
 0x99a   : > { %2209 = vmatpush.msra.mxu0 %v2460_v63 }
 0x99c   : > { %2210 = vmatpush.msra.mxu0 %v2459_v0 }
 0x99e   : > { %2211 = vmatpush.msra.mxu0 %v2458_v1 }
 0x9a0   : > { %2212 = vmatpush.msra.mxu0 %v2457_v2 }
 0x9a2   : > { %2213 = vmatpush.msra.mxu0 %v2456_v3 }
 0x9a4   : > { %2214 = vmatpush.msra.mxu0 %v2455_v60 }
 0xa00   : > { %v1946_v17 = vpop.f32.mrf.mxu0 }
 0xa01   : > { %2443 = vmatmul.msk.f32.vlgmr.msrb.gmra.mxu0 %vm919_vm5, %v1946_v17  ;;  %v2516_v17 = vld [vmem:[%s3368_s13 + $0x1] ss:$0 sm:$0xff] }
 0xa11   : > { %v1923_v18 = vpop.f32.mrf.mxu3 }
 0xa12   : > { %2442 = vmatmul.msk.f32.vlgmr.msrb.gmra.mxu3 %vm919_vm5, %v1923_v18 }
 0xa15   : > { %v1969_v19 = vpop.f32.mrf.mxu1 }
 0xa16   : > { %2444 = vmatmul.msk.f32.vlgmr.msra.gmra.mxu1 %vm919_vm5, %v1969_v19 }
 0xa1a   : > { %v1992_v20 = vpop.f32.mrf.mxu2 }
 0xa1b   : > { %2445 = vmatmul.msk.f32.vlgmr.msra.gmra.mxu2 %vm919_vm5, %v1992_v20 }
 0xa7e   : > { %v2043_v21 = vpop.f32.mrf.mxu0 }
 0xa7f   : > { %v2093_v24 = vsel %vm535_vm0, %v2043_v21, 0.0 }
 0xa93   : > { %v2066_v25 = vpop.f32.mrf.mxu1 }
 0xa94   : > { %v2095_v27 = vsel %vm535_vm0, %v2066_v25, 0.0 }
 0xa95   : > { %v2020_v22 = vpop.f32.mrf.mxu3 }
 0xa96   : > { %v2092_v23 = vsel %vm535_vm0, %v2020_v22, 0.0 }
 0xa97   : > { %v2094_v26 = vadd.f32 %v2093_v24, %v2092_v23 }
 0xa99   : > { %v2096_v29 = vadd.f32 %v2095_v27, %v2094_v26 }
 0xa9e   : > { %v2089_v28 = vpop.f32.mrf.mxu2 }
 0xa9f   : > { %v2097_v31 = vsel %vm535_vm0, %v2089_v28, 0.0 }
 0xaa0   : > { %v2098_v32 = vadd.f32 %v2097_v31, %v2096_v29 }
 0xaa2   : > { %v2104_v33 = vadd.f32 %v2512_v30, %v2098_v32 }
 0xaa4   : > { %v2105_v34 = vadd.f32 %v2104_v33, %v3124_v36  ;;  %v2451_v36 = vld [vmem:[%s3365_s10 + $0x30] sm:$0xff] }
 0xaa5   : > { %2166 = vmatpush.msra.mxu3 %v2451_v36 }
 0xaa6   : > { %v2110_v35 = vsel %vm535_vm0, %v2105_v34, 0.0 }
 0xaa7   : > { %2111 = vadd.xlane.f32.xlu1 %v2110_v35  ;;  %2167 = vmatpush.msra.mxu3 %v2450_v43 }
 0xaa9   : > { %2168 = vmatpush.msra.mxu3 %v2449_v44 }
 0xb1a   : > { %v2112_v37 = vpop.xlane.xlu1 %2111 }
 0xb1b   : > { %v2113_v38 = vmul.f32 %v2112_v37, %v2682_v8  ;;  %v2517_v37 = vld [vmem:[%s3369_s14 + $0x1] ss:$0 sm:$0xff] }
 0xb1d   : > { %v2114_v39 = vsub.f32 %v2105_v34, %v2113_v38 }
 0xb1f   : > { %v2115_v40 = vmul.f32 %v2114_v39, %v2114_v39 }
 0xb21   : > { %v2116_v41 = vsel %vm535_vm0, %v2115_v40, 0.0 }
 0xb22   : > { %2117 = vadd.xlane.f32.xlu2 %v2116_v41 }
 0xb95   : > { %v2118_v45 = vpop.xlane.xlu2 %2117 }
 0xb96   : > { %v2119_v46 = vmul.f32 %v2118_v45, %v2682_v8 }
 0xb98   : > { %v2120_v47 = vadd.f32 1e-12, %v2119_v46 }
 0xb9a   : > { %2561 = vrsqrt.f32 %v2120_v47  ;;  %vm2127_vm14 = vweird.f32 %v2120_v47 }
 0xba0   : > { %v2562_v48 = vpop.eup %2561 }
 0xba1   : > { %v2122_v49 = vmul.f32 %v2562_v48, %v2120_v47  ;;  %vm2128_vm13 = vweird.f32 %v2562_v48 }
 0xba2   : > { %vm2129_vm15 = vmor %vm2127_vm14, %vm2128_vm13 }
 0xba3   : > { %v2123_v50 = vmul.f32 %v2562_v48, %v2122_v49 }
 0xba5   : > { %v2124_v51 = vmul.f32 0.5, %v2123_v50 }
 0xba7   : > { %v2125_v52 = vsub.f32 1.5, %v2124_v51 }
 0xba9   : > { %v2126_v54 = vmul.f32 %v2562_v48, %v2125_v52 }
 0xbab   : > { %v2130_v55 = vsel %vm2129_vm15, %v2562_v48, %v2126_v54 }
 0xbac   : > { %v2131_v56 = vmul.f32 %v2130_v55, %v2114_v39 }
 0xbae   : > { %v2135_v58 = vmul.f32 %v2513_v53, %v2131_v56 }
 0xbb0   : > { %v2139_v59 = vadd.f32 %v2514_v57, %v2135_v58 }
 0xbb2   : > { %2454 = vmatmul.msk.f32.vlgmr.msra.gmra.mxu3 %vm535_vm0, %v2139_v59 }
 0xc35   : > { %v2170_v5 = vpop.f32.mrf.mxu3 }
 0xc36   : > { %v2171_v6 = vadd.f32 %v2515_v4, %v2170_v5 }
 0xc38   : > { %v2173_v7 = vmul.f32 %v2171_v6, %v2171_v6 }
 0xc3a   : > { %v2174_v9 = vmul.f32 %v2173_v7, %v2171_v6 }
 0xc3c   : > { %v2175_v10 = vmul.f32 0.044715, %v2174_v9 }
 0xc3e   : > { %v2176_v11 = vadd.f32 %v2175_v10, %v2171_v6 }
 0xc40   : > { %v2177_v12 = vmul.f32 0.7978846, %v2176_v11 }
 0xc42   : > { %2563 = vtanh.f32 %v2177_v12 }
 0xc48   : > { %v2564_v13 = vpop.eup %2563 }
 0xc49   : > { %v2179_v14 = vadd.f32 1.0, %v2564_v13 }
 0xc4b   : > { %v2180_v15 = vmul.f32 0.5, %v2179_v14 }
 0xc4d   : > { %v2181_v16 = vmul.f32 %v2180_v15, %v2171_v6 }
 0xc4f   : > { %2464 = vmatmul.msk.f32.vlgmr.msra.gmra.mxu0 %vm1353_vm9, %v2181_v16 }
 0xccc   : > { %v2216_v18 = vpop.f32.mrf.mxu0 }
 0xccd   : > { %v2217_v19 = vadd.f32 %v2516_v17, %v2216_v18 }
 0xccf   : > { %v2219_v20 = vadd.f32 %v2217_v19, %v2139_v59 }
 0xcd1   : > { %v2224_v21 = vsel %vm535_vm0, %v2219_v20, 0.0 }
 0xcd2   : > { %2225 = vadd.xlane.f32.xlu0 %v2224_v21 }
 0xd45   : > { %v2226_v22 = vpop.xlane.xlu0 %2225 }
 0xd46   : > { %v2227_v23 = vmul.f32 %v2226_v22, %v2682_v8 }
 0xd48   : > { %v2228_v24 = vsub.f32 %v2219_v20, %v2227_v23 }
 0xd4a   : > { %v2229_v25 = vmul.f32 %v2228_v24, %v2228_v24 }
 0xd4c   : > { %v2230_v26 = vsel %vm535_vm0, %v2229_v25, 0.0 }
 0xd4d   : > { %2231 = vadd.xlane.f32.xlu1 %v2230_v26 }
 0xdc0   : > { %v2232_v27 = vpop.xlane.xlu1 %2231 }
 0xdc1   : > { %v2233_v28 = vmul.f32 %v2232_v27, %v2682_v8  ;;  %v2518_v8 = vld [vmem:[%s3370_s15 + $0x1] ss:$0 sm:$0xff] }
 0xdc3   : > { %v2234_v29 = vadd.f32 1e-12, %v2233_v28 }
 0xdc5   : > { %2565 = vrsqrt.f32 %v2234_v29  ;;  %vm2241_vm2 = vweird.f32 %v2234_v29 }
 0xdcb   : > { %v2566_v30 = vpop.eup %2565 }
 0xdcc   : > { %v2236_v31 = vmul.f32 %v2566_v30, %v2234_v29  ;;  %vm2242_vm1 = vweird.f32 %v2566_v30 }
 0xdcd   : > { %vm2243_vm3 = vmor %vm2241_vm2, %vm2242_vm1 }
 0xdce   : > { %v2237_v32 = vmul.f32 %v2566_v30, %v2236_v31 }
 0xdd0   : > { %v2238_v33 = vmul.f32 0.5, %v2237_v32 }
 0xdd2   : > { %v2239_v34 = vsub.f32 1.5, %v2238_v33 }
 0xdd4   : > { %v2240_v35 = vmul.f32 %v2566_v30, %v2239_v34 }
 0xdd6   : > { %v2244_v38 = vsel %vm2243_vm3, %v2566_v30, %v2240_v35 }
 0xdd7   : > { %v2245_v39 = vmul.f32 %v2244_v38, %v2228_v24 }
 0xdd9   : > { %v2249_v40 = vmul.f32 %v2517_v37, %v2245_v39 }
 0xddb   : > { %v2253_v41 = vadd.f32 %v2518_v8, %v2249_v40 }
 0xddd   : > { %2254 = vst.msk [vmem:[%s530_s19] sm:$0xff] %vm535_vm0, %v2253_v41 }
 0xdde PF: > { %s26_s21 = sadd.s32 1, %s2573_s21  }
 0xddf   : > { %p23_p4 = scmp.ge.s32.totalorder %s26_s21, 4  }
 0xde1   :  { %25 = sbr.rel (!%p23_p4) target bundleno = 2 (0x2), region = 129 }

</bundles_post_ra>
